<compile_context>
chip_gen: v7x
topology: tpu7x:2x2x1
jax: 0.10.0
libtpu: 0.0.40
codegen_flags: <defaults>
</compile_context>

<pallas_src>
import functools

import jax
import jax.numpy as jnp
from jax.experimental import pallas as pl
from jax.experimental.pallas import tpu as pltpu

# Model dimensions (per the module: text_input_dim=768, numeric branch -> 64,
# text branch -> 256, hidden_dim=128).
N_NUMERICAL_FEATURES = 16
TEXT_INPUT_DIM = 768
NUMERIC_HIDDEN = 64
TEXT_HIDDEN = 256
HIDDEN_DIM = 128
N_CLASSES = 8
N_CLASSES_PADDED = 128          # lane-dense (128-wide) output store

TILE_B = 128                    # batch tile (multiple of 8 for f32 sublanes)
BATCH = 256                     # demo batch: 2 grid steps -> exercises pipeline


def multimodal_kernel(nx_ref, tx_ref,
                      w1_ref, b1_ref,
                      w2_ref, b2_ref,
                      w3a_ref, w3b_ref, b3_ref,
                      w4_ref, b4_ref,
                      out_ref):
    # numeric branch: Linear -> ReLU (Dropout = identity at inference)
    n_out = jnp.dot(nx_ref[...], w1_ref[...],
                    preferred_element_type=jnp.float32) + b1_ref[...]
    n_out = jnp.maximum(n_out, 0.0)

    # text branch: bf16 MXU operands, f32 accumulate; bias/ReLU in f32
    t_out = jnp.dot(tx_ref[...], w2_ref[...],
                    preferred_element_type=jnp.float32) + b2_ref[...]
    t_out = jnp.maximum(t_out, 0.0)

    # fusion layer 1: concat([n_out, t_out], dim=1) @ W3 + b3
    # == n_out @ W3[:64] + t_out @ W3[64:] + b3  (concat folded into split matmuls)
    h = (jnp.dot(n_out, w3a_ref[...], preferred_element_type=jnp.float32)
         + jnp.dot(t_out, w3b_ref[...], preferred_element_type=jnp.float32)
         + b3_ref[...])
    h = jnp.maximum(h, 0.0)

    # fusion layer 2: Linear -> logits (zero-padded to 128 lanes; sliced outside)
    out_ref[...] = (jnp.dot(h, w4_ref[...],
                            preferred_element_type=jnp.float32) + b4_ref[...])


@jax.jit
def multimodal_forward(numeric_x, text_x, params):
    (w1, b1, w2, b2, w3a, w3b, b3, w4p, b4p) = params
    B = numeric_x.shape[0]
    n_tiles = pl.cdiv(B, TILE_B)
    B_pad = n_tiles * TILE_B
    if B_pad != B:
        numeric_x = jnp.pad(numeric_x, ((0, B_pad - B), (0, 0)))
        text_x = jnp.pad(text_x, ((0, B_pad - B), (0, 0)))

    # halve the dominant HBM->VMEM transfer (text activations + w2 already bf16)
    text_x_bf16 = text_x.astype(jnp.bfloat16)

    def batch_spec(shape):
        return pl.BlockSpec(shape, lambda i: (i, 0))

    def resident_spec(arr):
        # constant block index -> weights/biases DMA'd once, stay in VMEM
        return pl.BlockSpec(arr.shape, lambda i: (0, 0))

    out_padded = pl.pallas_call(
        multimodal_kernel,
        out_shape=jax.ShapeDtypeStruct((B_pad, N_CLASSES_PADDED), jnp.float32),
        grid=(n_tiles,),
        in_specs=[
            batch_spec((TILE_B, N_NUMERICAL_FEATURES)),
            batch_spec((TILE_B, TEXT_INPUT_DIM)),
            resident_spec(w1), resident_spec(b1),
            resident_spec(w2), resident_spec(b2),
            resident_spec(w3a), resident_spec(w3b), resident_spec(b3),
            resident_spec(w4p), resident_spec(b4p),
        ],
        out_specs=batch_spec((TILE_B, N_CLASSES_PADDED)),
        compiler_params=pltpu.CompilerParams(
            dimension_semantics=("parallel",)),   # 2x on v7x's dual TC
    )(numeric_x, text_x_bf16, w1, b1, w2, b2, w3a, w3b, b3, w4p, b4p)

    return out_padded[:B, :N_CLASSES]


def init_params(key):
    ks = jax.random.split(key, 8)

    def lin(kw, fan_in, fan_out):
        scale = 1.0 / jnp.sqrt(jnp.float32(fan_in))
        return jax.random.uniform(kw, (fan_in, fan_out), jnp.float32, -scale, scale)

    w1 = lin(ks[0], N_NUMERICAL_FEATURES, NUMERIC_HIDDEN)
    b1 = jax.random.uniform(ks[1], (1, NUMERIC_HIDDEN), jnp.float32, -0.1, 0.1)

    # text-branch weight stored in bf16 (85% of all weight bytes)
    w2 = lin(ks[2], TEXT_INPUT_DIM, TEXT_HIDDEN).astype(jnp.bfloat16)
    b2 = jax.random.uniform(ks[3], (1, TEXT_HIDDEN), jnp.float32, -0.1, 0.1)

    # fusion first linear: weight (64+256, hidden) split into numeric/text blocks
    w3 = lin(ks[4], NUMERIC_HIDDEN + TEXT_HIDDEN, HIDDEN_DIM)
    w3a = w3[:NUMERIC_HIDDEN, :]
    w3b = w3[NUMERIC_HIDDEN:, :]
    b3 = jax.random.uniform(ks[5], (1, HIDDEN_DIM), jnp.float32, -0.1, 0.1)

    # final linear, zero-padded from 8 to 128 output lanes for a lane-dense store
    w4 = lin(ks[6], HIDDEN_DIM, N_CLASSES)
    b4 = jax.random.uniform(ks[7], (1, N_CLASSES), jnp.float32, -0.1, 0.1)
    w4p = jnp.pad(w4, ((0, 0), (0, N_CLASSES_PADDED - N_CLASSES)))
    b4p = jnp.pad(b4, ((0, 0), (0, N_CLASSES_PADDED - N_CLASSES)))

    return (w1, b1, w2, b2, w3a, w3b, b3, w4p, b4p)


def reference_forward(numeric_x, text_x, params):
    """Pure-JAX reference matching the PyTorch forward (inference mode),
    with the same bf16-operand / f32-accumulate text matmul as the kernel."""
    (w1, b1, w2, b2, w3a, w3b, b3, w4p, b4p) = params
    n = jnp.maximum(numeric_x @ w1 + b1, 0.0)
    t = jnp.maximum(
        jnp.dot(text_x.astype(jnp.bfloat16), w2,
                preferred_element_type=jnp.float32) + b2, 0.0)
    fused = jnp.concatenate([n, t], axis=1)
    w3 = jnp.concatenate([w3a, w3b], axis=0)
    h = jnp.maximum(fused @ w3 + b3, 0.0)
    return h @ w4p[:, :N_CLASSES] + b4p[:, :N_CLASSES]


if __name__ == "__main__":
    key = jax.random.PRNGKey(0)
    k_num, k_txt, k_par = jax.random.split(key, 3)
    params = init_params(k_par)

    # Main run: batch amortizes the resident weights over the batch grid.
    numeric_x = jax.random.normal(k_num, (BATCH, N_NUMERICAL_FEATURES), jnp.float32)
    text_x = jax.random.normal(k_txt, (BATCH, TEXT_INPUT_DIM), jnp.float32)

    out = jax.block_until_ready(multimodal_forward(numeric_x, text_x, params))
    ref = reference_forward(numeric_x, text_x, params)
    assert out.shape == (BATCH, N_CLASSES)
    assert jnp.allclose(out, ref, atol=2e-3, rtol=2e-3)

    # Small ragged batch: exercises the pad-to-TILE_B / slice path.
    out_small = jax.block_until_ready(
        multimodal_forward(numeric_x[:8], text_x[:8], params))
    ref_small = reference_forward(numeric_x[:8], text_x[:8], params)
    assert out_small.shape == (8, N_CLASSES)
    assert jnp.allclose(out_small, ref_small, atol=2e-3, rtol=2e-3)

    # TODO(synk): Dropout(0.1) is inference-mode identity here; no stochastic path.
    print("KERNEL_OK")
</pallas_src>

<mosaic_0001>
module attributes {stable_mosaic.version = 11 : i64} {
  func.func @multimodal_kernel(%arg0: i32, %arg1: memref<128x16xf32, #tpu.memory_space<vmem>>, %arg2: memref<128x768xbf16, #tpu.memory_space<vmem>>, %arg3: memref<16x64xf32, #tpu.memory_space<vmem>>, %arg4: memref<1x64xf32, #tpu.memory_space<vmem>>, %arg5: memref<768x256xbf16, #tpu.memory_space<vmem>>, %arg6: memref<1x256xf32, #tpu.memory_space<vmem>>, %arg7: memref<64x128xf32, #tpu.memory_space<vmem>>, %arg8: memref<256x128xf32, #tpu.memory_space<vmem>>, %arg9: memref<1x128xf32, #tpu.memory_space<vmem>>, %arg10: memref<128x128xf32, #tpu.memory_space<vmem>>, %arg11: memref<1x128xf32, #tpu.memory_space<vmem>>, %arg12: memref<128x128xf32, #tpu.memory_space<vmem>>) attributes {dimension_semantics = [#tpu.dimension_semantics<parallel>], iteration_bounds = array<i64: 2>, scalar_prefetch = 0 : i64, scratch_operands = 0 : i64, tpu.core_type = #tpu.core_type<tc>, window_params = [{transform_indices = @transform_0, window_bounds = array<i64: 128, 16>}, {transform_indices = @transform_1, window_bounds = array<i64: 128, 768>}, {pipeline_mode = #tpu.pipeline_mode<synchronous>, transform_indices = @transform_2, window_bounds = array<i64: 16, 64>}, {pipeline_mode = #tpu.pipeline_mode<synchronous>, transform_indices = @transform_3, window_bounds = array<i64: 1, 64>}, {pipeline_mode = #tpu.pipeline_mode<synchronous>, transform_indices = @transform_4, window_bounds = array<i64: 768, 256>}, {pipeline_mode = #tpu.pipeline_mode<synchronous>, transform_indices = @transform_5, window_bounds = array<i64: 1, 256>}, {pipeline_mode = #tpu.pipeline_mode<synchronous>, transform_indices = @transform_6, window_bounds = array<i64: 64, 128>}, {pipeline_mode = #tpu.pipeline_mode<synchronous>, transform_indices = @transform_7, window_bounds = array<i64: 256, 128>}, {pipeline_mode = #tpu.pipeline_mode<synchronous>, transform_indices = @transform_8, window_bounds = array<i64: 1, 128>}, {pipeline_mode = #tpu.pipeline_mode<synchronous>, transform_indices = @transform_9, window_bounds = array<i64: 128, 128>}, {pipeline_mode = #tpu.pipeline_mode<synchronous>, transform_indices = @transform_10, window_bounds = array<i64: 1, 128>}, {transform_indices = @transform_11, window_bounds = array<i64: 128, 128>}]} {
    %c0 = arith.constant 0 : index
    %c0_0 = arith.constant 0 : index
    %0 = vector.load %arg1[%c0, %c0_0] : memref<128x16xf32, #tpu.memory_space<vmem>>, vector<128x16xf32>
    %c0_1 = arith.constant 0 : index
    %c0_2 = arith.constant 0 : index
    %1 = vector.load %arg3[%c0_1, %c0_2] : memref<16x64xf32, #tpu.memory_space<vmem>>, vector<16x64xf32>
    %cst = arith.constant dense<0.000000e+00> : vector<128x64xf32>
    %2 = tpu.matmul %0, %1, %cst {dimension_numbers = #tpu.dot_dimension_numbers<[1], [0], [0], [1], [0, 0, 1, 1], [], []>} : vector<128x16xf32>, vector<16x64xf32>, vector<128x64xf32> -> vector<128x64xf32>
    %c0_3 = arith.constant 0 : index
    %c0_4 = arith.constant 0 : index
    %3 = vector.load %arg4[%c0_3, %c0_4] : memref<1x64xf32, #tpu.memory_space<vmem>>, vector<1x64xf32>
    %4 = vector.broadcast %3 : vector<1x64xf32> to vector<128x64xf32>
    %5 = arith.addf %2, %4 : vector<128x64xf32>
    %cst_5 = arith.constant 0.000000e+00 : f32
    %6 = vector.broadcast %cst_5 : f32 to vector<128x64xf32>
    %7 = arith.maximumf %5, %6 : vector<128x64xf32>
    %c0_6 = arith.constant 0 : index
    %c0_7 = arith.constant 0 : index
    %8 = vector.load %arg2[%c0_6, %c0_7] : memref<128x768xbf16, #tpu.memory_space<vmem>>, vector<128x768xbf16>
    %c0_8 = arith.constant 0 : index
    %c0_9 = arith.constant 0 : index
    %9 = vector.load %arg5[%c0_8, %c0_9] : memref<768x256xbf16, #tpu.memory_space<vmem>>, vector<768x256xbf16>
    %cst_10 = arith.constant dense<0.000000e+00> : vector<128x256xf32>
    %10 = tpu.matmul %8, %9, %cst_10 {dimension_numbers = #tpu.dot_dimension_numbers<[1], [0], [0], [1], [0, 0, 1, 1], [], []>} : vector<128x768xbf16>, vector<768x256xbf16>, vector<128x256xf32> -> vector<128x256xf32>
    %c0_11 = arith.constant 0 : index
    %c0_12 = arith.constant 0 : index
    %11 = vector.load %arg6[%c0_11, %c0_12] : memref<1x256xf32, #tpu.memory_space<vmem>>, vector<1x256xf32>
    %12 = vector.broadcast %11 : vector<1x256xf32> to vector<128x256xf32>
    %13 = arith.addf %10, %12 : vector<128x256xf32>
    %cst_13 = arith.constant 0.000000e+00 : f32
    %14 = vector.broadcast %cst_13 : f32 to vector<128x256xf32>
    %15 = arith.maximumf %13, %14 : vector<128x256xf32>
    %c0_14 = arith.constant 0 : index
    %c0_15 = arith.constant 0 : index
    %16 = vector.load %arg7[%c0_14, %c0_15] : memref<64x128xf32, #tpu.memory_space<vmem>>, vector<64x128xf32>
    %cst_16 = arith.constant dense<0.000000e+00> : vector<128x128xf32>
    %17 = tpu.matmul %7, %16, %cst_16 {dimension_numbers = #tpu.dot_dimension_numbers<[1], [0], [0], [1], [0, 0, 1, 1], [], []>} : vector<128x64xf32>, vector<64x128xf32>, vector<128x128xf32> -> vector<128x128xf32>
    %c0_17 = arith.constant 0 : index
    %c0_18 = arith.constant 0 : index
    %18 = vector.load %arg8[%c0_17, %c0_18] : memref<256x128xf32, #tpu.memory_space<vmem>>, vector<256x128xf32>
    %cst_19 = arith.constant dense<0.000000e+00> : vector<128x128xf32>
    %19 = tpu.matmul %15, %18, %cst_19 {dimension_numbers = #tpu.dot_dimension_numbers<[1], [0], [0], [1], [0, 0, 1, 1], [], []>} : vector<128x256xf32>, vector<256x128xf32>, vector<128x128xf32> -> vector<128x128xf32>
    %20 = arith.addf %17, %19 : vector<128x128xf32>
    %c0_20 = arith.constant 0 : index
    %c0_21 = arith.constant 0 : index
    %21 = vector.load %arg9[%c0_20, %c0_21] : memref<1x128xf32, #tpu.memory_space<vmem>>, vector<1x128xf32>
    %22 = vector.broadcast %21 : vector<1x128xf32> to vector<128x128xf32>
    %23 = arith.addf %20, %22 : vector<128x128xf32>
    %cst_22 = arith.constant 0.000000e+00 : f32
    %24 = vector.broadcast %cst_22 : f32 to vector<128x128xf32>
    %25 = arith.maximumf %23, %24 : vector<128x128xf32>
    %c0_23 = arith.constant 0 : index
    %c0_24 = arith.constant 0 : index
    %26 = vector.load %arg10[%c0_23, %c0_24] : memref<128x128xf32, #tpu.memory_space<vmem>>, vector<128x128xf32>
    %cst_25 = arith.constant dense<0.000000e+00> : vector<128x128xf32>
    %27 = tpu.matmul %25, %26, %cst_25 {dimension_numbers = #tpu.dot_dimension_numbers<[1], [0], [0], [1], [0, 0, 1, 1], [], []>} : vector<128x128xf32>, vector<128x128xf32>, vector<128x128xf32> -> vector<128x128xf32>
    %c0_26 = arith.constant 0 : index
    %c0_27 = arith.constant 0 : index
    %28 = vector.load %arg11[%c0_26, %c0_27] : memref<1x128xf32, #tpu.memory_space<vmem>>, vector<1x128xf32>
    %29 = vector.broadcast %28 : vector<1x128xf32> to vector<128x128xf32>
    %30 = arith.addf %27, %29 : vector<128x128xf32>
    %c0_28 = arith.constant 0 : index
    %c0_29 = arith.constant 0 : index
    %31 = vector.load %arg12[%c0_28, %c0_29] : memref<128x128xf32, #tpu.memory_space<vmem>>, vector<128x128xf32>
    tpu.vector_store %arg12[%c0_28, %c0_29], %30 {strides = array<i32>} : memref<128x128xf32, #tpu.memory_space<vmem>>, vector<128x128xf32>,
    return
  }
  func.func @transform_0(%arg0: i32) -> (i32, i32) {
    %c0_i32 = arith.constant 0 : i32
    %c0_i32_0 = arith.constant 0 : i32
    return %arg0, %c0_i32 : i32, i32
  }
  func.func @transform_1(%arg0: i32) -> (i32, i32) {
    %c0_i32 = arith.constant 0 : i32
    %c0_i32_0 = arith.constant 0 : i32
    return %arg0, %c0_i32 : i32, i32
  }
  func.func @transform_2(%arg0: i32) -> (i32, i32) {
    %c0_i32 = arith.constant 0 : i32
    %c0_i32_0 = arith.constant 0 : i32
    %c0_i32_1 = arith.constant 0 : i32
    return %c0_i32, %c0_i32_0 : i32, i32
  }
  func.func @transform_3(%arg0: i32) -> (i32, i32) {
    %c0_i32 = arith.constant 0 : i32
    %c0_i32_0 = arith.constant 0 : i32
    %c0_i32_1 = arith.constant 0 : i32
    return %c0_i32, %c0_i32_0 : i32, i32
  }
  func.func @transform_4(%arg0: i32) -> (i32, i32) {
    %c0_i32 = arith.constant 0 : i32
    %c0_i32_0 = arith.constant 0 : i32
    %c0_i32_1 = arith.constant 0 : i32
    return %c0_i32, %c0_i32_0 : i32, i32
  }
  func.func @transform_5(%arg0: i32) -> (i32, i32) {
    %c0_i32 = arith.constant 0 : i32
    %c0_i32_0 = arith.constant 0 : i32
    %c0_i32_1 = arith.constant 0 : i32
    return %c0_i32, %c0_i32_0 : i32, i32
  }
  func.func @transform_6(%arg0: i32) -> (i32, i32) {
    %c0_i32 = arith.constant 0 : i32
    %c0_i32_0 = arith.constant 0 : i32
    %c0_i32_1 = arith.constant 0 : i32
    return %c0_i32, %c0_i32_0 : i32, i32
  }
  func.func @transform_7(%arg0: i32) -> (i32, i32) {
    %c0_i32 = arith.constant 0 : i32
    %c0_i32_0 = arith.constant 0 : i32
    %c0_i32_1 = arith.constant 0 : i32
    return %c0_i32, %c0_i32_0 : i32, i32
  }
  func.func @transform_8(%arg0: i32) -> (i32, i32) {
    %c0_i32 = arith.constant 0 : i32
    %c0_i32_0 = arith.constant 0 : i32
    %c0_i32_1 = arith.constant 0 : i32
    return %c0_i32, %c0_i32_0 : i32, i32
  }
  func.func @transform_9(%arg0: i32) -> (i32, i32) {
    %c0_i32 = arith.constant 0 : i32
    %c0_i32_0 = arith.constant 0 : i32
    %c0_i32_1 = arith.constant 0 : i32
    return %c0_i32, %c0_i32_0 : i32, i32
  }
  func.func @transform_10(%arg0: i32) -> (i32, i32) {
    %c0_i32 = arith.constant 0 : i32
    %c0_i32_0 = arith.constant 0 : i32
    %c0_i32_1 = arith.constant 0 : i32
    return %c0_i32, %c0_i32_0 : i32, i32
  }
  func.func @transform_11(%arg0: i32) -> (i32, i32) {
    %c0_i32 = arith.constant 0 : i32
    %c0_i32_0 = arith.constant 0 : i32
    return %arg0, %c0_i32 : i32, i32
  }
}

</mosaic_0001>

<bundles_post_ra>
// kernel: multimodal_forward.1
= control target key start
LH: loop header
LB: loop body
LE: loop exit
PB: predicated region body
PF: predicated region fallthrough
CT: control target
= control target key end

     0   :  { %s3542_s17 = smov 0   ;;  %s4438_s0 = inlined_call_operand.vmem [shape: f32[256,16], index: 0, kind: input, shape index: {}]   ;;  %s4439_s1 = inlined_call_operand.vmem [shape: bf16[256,768], index: 1, kind: input, shape index: {}]   ;;  %s4440_s2 = inlined_call_operand.vmem [shape: f32[16,64], index: 2, kind: input, shape index: {}]   ;;  %s4441_s3 = inlined_call_operand.vmem [shape: f32[1,64], index: 3, kind: input, shape index: {}]   ;;  %s4442_s4 = inlined_call_operand.vmem [shape: bf16[768,256], index: 4, kind: input, shape index: {}]   ;;  %s4443_s5 = inlined_call_operand.vmem [shape: f32[1,256], index: 5, kind: input, shape index: {}]   ;;  %s4444_s6 = inlined_call_operand.vmem [shape: f32[64,128], index: 6, kind: input, shape index: {}]   ;;  %s4445_s7 = inlined_call_operand.vmem [shape: f32[256,128], index: 7, kind: input, shape index: {}]   ;;  %s4446_s8 = inlined_call_operand.vmem [shape: f32[1,128], index: 8, kind: input, shape index: {}]   ;;  %s4447_s9 = inlined_call_operand.vmem [shape: f32[128,128], index: 9, kind: input, shape index: {}]   ;;  %s4448_s10 = inlined_call_operand.vmem [shape: f32[1,128], index: 10, kind: input, shape index: {}]   ;;  %s4449_s11 = inlined_call_operand.vmem [shape: f32[256,128], index: 11, kind: output, shape index: {}]  }
   0x1 LB: > { %s2567_s18 = sadd.s32 4294967295, %s3480_s17   ;;  %p2571_p0 = scmp.ge.s32.totalorder %s3480_s17, 1  ;;  %s3480_s17 = sphi %s3542_s17, %s21_s17  }
   0x2   : > { %p350_p1 = scmp.lt.s32.totalorder %s3480_s17, 3 }
   0x4   : > { %p351_p2 = pnand %p2571_p0, %p350_p1 }
   0x5   : > { %v3258_v0 = vld [vmem:[%s4442_s4 + $0x4] ss:$8 sps:$4 sm:$0xff] (!%p351_p2)   ;;  %v3260_v1 = vld [vmem:[%s4442_s4] ss:$8 sps:$4 sm:$0xff] (!%p351_p2)   ;;  %v3261_v2 = vld [vmem:[%s4442_s4 + $0x14] ss:$8 sps:$4 sm:$0xff] (!%p351_p2)  }
   0x6   : > { %354 = sbr.rel (%p351_p2) target bundleno = 912 (0x390), region = 64  ;;  %1526 = vmatprep.subr.bf16.mxu1 (!%p351_p2), %v3258_v0  ;;  %v3263_v3 = vld [vmem:[%s4442_s4 + $0x10] ss:$8 sps:$4 sm:$0xff] (!%p351_p2)   ;;  %v3264_v4 = vld [vmem:[%s4442_s4 + $0x24] ss:$8 sps:$4 sm:$0xff] (!%p351_p2)   ;;  %s2572_s29 = sshll.u32 (!%p351_p2), %s2567_s18, 4 }
   0x7   : > { %1527 = vmatpush1.bf16.msra.mxu1 (!%p351_p2), %v3260_v1  ;;  %v3266_v5 = vld [vmem:[%s4442_s4 + $0x20] ss:$8 sps:$4 sm:$0xff] (!%p351_p2)   ;;  %v3267_v6 = vld [vmem:[%s4442_s4 + $0x34] ss:$8 sps:$4 sm:$0xff] (!%p351_p2)   ;;  %p397_p3 = scmp.lt.s32.totalorder (!%p351_p2), %s2572_s29, 31  ;;  %vm440_vm0 = vcmask (!%p351_p2), 130048  }
   0x8   : > { %1528 = vmatprep.subr.bf16.mxu1 (!%p351_p2), %v3261_v2  ;;  %v3269_v7 = vld [vmem:[%s4442_s4 + $0x30] ss:$8 sps:$4 sm:$0xff] (!%p351_p2)   ;;  %v3270_v8 = vld [vmem:[%s4442_s4 + $0x44] ss:$8 sps:$4 sm:$0xff] (!%p351_p2)   ;;  %v3272_v9 = vld [vmem:[%s4442_s4 + $0x40] ss:$8 sps:$4 sm:$0xff] (!%p351_p2)  }
   0x9   : > { %v3273_v10 = vld [vmem:[%s4442_s4 + $0x54] ss:$8 sps:$4 sm:$0xff] (!%p351_p2)   ;;  %v3275_v11 = vld [vmem:[%s4442_s4 + $0x50] ss:$8 sps:$4 sm:$0xff] (!%p351_p2)   ;;  %v3276_v12 = vld [vmem:[%s4442_s4 + $0x64] ss:$8 sps:$4 sm:$0xff] (!%p351_p2)  }
   0xa   : > { %v431_v13 = vld [vmem:[%s4440_s2] sm:$0xff] (!%p351_p2)  ;;  %v432_v14 = vld [vmem:[%s4440_s2 + $0x8] sm:$0xff] (!%p351_p2)  ;;  %v3279_v18 = vld [vmem:[%s4442_s4 + $0x74] ss:$8 sps:$4 sm:$0xff] (!%p351_p2)   ;;  %vm2082_vm1 = vcmask (!%p351_p2), 523264  }
   0xb   : > { %1529 = vmatpush1.bf16.msra.mxu1 (!%p351_p2), %v3263_v3  ;;  %v3278_v15 = vld [vmem:[%s4442_s4 + $0x60] ss:$8 sps:$4 sm:$0xff] (!%p351_p2)   ;;  %v3037_v16 = vpack.c.bf16 (!%p351_p2), %v432_v14, %v431_v13  ;;  %v3628_v21 = vld [vmem:[%s4442_s4 + $0x204] ss:$8 sps:$4 sm:$0xff] (!%p351_p2)   ;;  %v3281_v23 = vld [vmem:[%s4442_s4 + $0x70] ss:$8 sps:$4 sm:$0xff] (!%p351_p2)  }
   0xc   : > { %1530 = vmatprep.subr.bf16.mxu1 (!%p351_p2), %v3264_v4  ;;  %v3622_v20 = vld [vmem:[%s4442_s4 + $0x200] ss:$8 sps:$4 sm:$0xff] (!%p351_p2)   ;;  %v3282_v24 = vld [vmem:[%s4442_s4 + $0x84] ss:$8 sps:$4 sm:$0xff] (!%p351_p2)   ;;  %v3642_v25 = vld [vmem:[%s4442_s4 + $0x214] ss:$8 sps:$4 sm:$0xff] (!%p351_p2)  }
   0xd   : > { %s4451_s29 = smov (!%p397_p3, %s2572_s29), 31  ;;  %3038 = vmatprep.subr.bf16.mxu0 %v3037_v16  ;;  %v3648_v26 = vld [vmem:[%s4442_s4 + $0x210] ss:$8 sps:$4 sm:$0xff]   ;;  %v3284_v27 = vld [vmem:[%s4442_s4 + $0x80] ss:$8 sps:$4 sm:$0xff]  }
   0xe   : > { %s3249_s24 = smul.u32 24, %s4451_s29  ;;  %s2573_s25 = sshll.u32 %s4451_s29, 3  ;;  %3040 = vmatpush3.bf16.msra.mxu0 %v3037_v16  ;;  %v3285_v28 = vld [vmem:[%s4442_s4 + $0x94] ss:$8 sps:$4 sm:$0xff]   ;;  %v3660_v29 = vld [vmem:[%s4442_s4 + $0x224] ss:$8 sps:$4 sm:$0xff]  }
   0xf   : > { %1531 = vmatpush1.bf16.msra.mxu1 %v3266_v5  ;;  %s3609_s22 = scalar_lea.vmem %s4438_s0, %s2573_s25  ;;  %1752 = vmatprep.subr.bf16.mxu0 %v3628_v21  ;;  %v3666_v30 = vld [vmem:[%s4442_s4 + $0x220] ss:$8 sps:$4 sm:$0xff]   ;;  %v3287_v31 = vld [vmem:[%s4442_s4 + $0x90] ss:$8 sps:$4 sm:$0xff]   ;;  %v3675_v32 = vld [vmem:[%s4442_s4 + $0x234] ss:$8 sps:$4 sm:$0xff]   ;;  %s4417_s13 = scalar_lea.vmem %s4449_s11, %s2573_s25 }
  0x10   : > { %1532 = vmatprep.subr.bf16.mxu1 %v3267_v6  ;;  %s3596_s14 = scalar_lea.vmem %s4439_s1, %s3249_s24  ;;  %v415_v19 = vld [vmem:[%s3609_s22] sm:$0xff]  ;;  %v416_v22 = vld [vmem:[%s3609_s22 + $0x8] sm:$0xff]  ;;  %v3684_v34 = vld [vmem:[%s4442_s4 + $0x230] ss:$8 sps:$4 sm:$0xff]  }
  0x11   : > { %v3308_v17 = vld [vmem:[%s3596_s14 + $0x4] ss:$24 sps:$4 sm:$0xff]   ;;  %2917 = vmatprep.mubr.msk.f32.mxu0 %vm440_vm0, %v415_v19  ;;  %v3290_v35 = vld [vmem:[%s4442_s4 + $0xa0] ss:$8 sps:$4 sm:$0xff]   ;;  %v3293_v39 = vld [vmem:[%s4442_s4 + $0xb0] ss:$8 sps:$4 sm:$0xff]  }
  0x12   : > { %1558 = vmatprep.mubr.bf16.mxu1 %v3308_v17  ;;  %2918 = vmatmul.mubr.msk.f32.vlgmr.msra.gmra.mrb[0].mxu0 %vm440_vm0, %v416_v22  ;;  %v3288_v33 = vld [vmem:[%s4442_s4 + $0xa4] ss:$8 sps:$4 sm:$0xff]   ;;  %v3291_v37 = vld [vmem:[%s4442_s4 + $0xb4] ss:$8 sps:$4 sm:$0xff]   ;;  %v3702_v38 = vld [vmem:[%s4442_s4 + $0x240] ss:$8 sps:$4 sm:$0xff]  }
  0x13   : > { %1533 = vmatpush1.bf16.msra.mxu1 %v3269_v7  ;;  %1753 = vmatpush1.bf16.msra.mxu0 %v3622_v20  ;;  %v3693_v36 = vld [vmem:[%s4442_s4 + $0x244] ss:$8 sps:$4 sm:$0xff]   ;;  %v3711_v40 = vld [vmem:[%s4442_s4 + $0x254] ss:$8 sps:$4 sm:$0xff]   ;;  %v3720_v42 = vld [vmem:[%s4442_s4 + $0x250] ss:$8 sps:$4 sm:$0xff]  }
  0x14   : > { %1534 = vmatprep.subr.bf16.mxu1 %v3270_v8  ;;  %1754 = vmatprep.subr.bf16.mxu0 %v3642_v25  ;;  %v3294_v41 = vld [vmem:[%s4442_s4 + $0xc4] ss:$8 sps:$4 sm:$0xff]   ;;  %v3296_v43 = vld [vmem:[%s4442_s4 + $0xc0] ss:$8 sps:$4 sm:$0xff]   ;;  %v3297_v45 = vld [vmem:[%s4442_s4 + $0xd4] ss:$8 sps:$4 sm:$0xff]  }
  0x15   : > { %v3729_v44 = vld [vmem:[%s4442_s4 + $0x264] ss:$8 sps:$4 sm:$0xff]   ;;  %v3738_v46 = vld [vmem:[%s4442_s4 + $0x260] ss:$8 sps:$4 sm:$0xff]   ;;  %v3299_v47 = vld [vmem:[%s4442_s4 + $0xd0] ss:$8 sps:$4 sm:$0xff]  }
  0x16   : > { %v3747_v48 = vld [vmem:[%s4442_s4 + $0x274] ss:$8 sps:$4 sm:$0xff]   ;;  %v3300_v49 = vld [vmem:[%s4442_s4 + $0xe4] ss:$8 sps:$4 sm:$0xff]   ;;  %v3302_v50 = vld [vmem:[%s4442_s4 + $0xe0] ss:$8 sps:$4 sm:$0xff]  }
  0x17   : > { %1535 = vmatpush1.bf16.msra.mxu1 %v3272_v9  ;;  %1755 = vmatpush1.bf16.msra.mxu0 %v3648_v26  ;;  %v3759_v51 = vld [vmem:[%s4442_s4 + $0x270] ss:$8 sps:$4 sm:$0xff]   ;;  %v3764_v52 = vld [vmem:[%s4442_s4 + $0x284] ss:$8 sps:$4 sm:$0xff]   ;;  %v3303_v55 = vld [vmem:[%s4442_s4 + $0xf4] ss:$8 sps:$4 sm:$0xff]  }
  0x18   : > { %1536 = vmatprep.subr.bf16.mxu1 %v3273_v10  ;;  %1756 = vmatprep.subr.bf16.mxu0 %v3660_v29  ;;  %v417_v53 = vld [vmem:[%s3609_s22 + $0x10] sm:$0xff]  ;;  %v418_v54 = vld [vmem:[%s3609_s22 + $0x18] sm:$0xff]  ;;  %v3781_v57 = vld [vmem:[%s4442_s4 + $0x280] ss:$8 sps:$4 sm:$0xff]  }
  0x19   : > { %2920 = vmatprep.mubr.msk.f32.mxu0 %vm440_vm0, %v417_v53  ;;  %v3305_v56 = vld [vmem:[%s4442_s4 + $0xf0] ss:$8 sps:$4 sm:$0xff]   ;;  %v3787_v58 = vld [vmem:[%s4442_s4 + $0x294] ss:$8 sps:$4 sm:$0xff]   ;;  %v419_v59 = vld [vmem:[%s3609_s22 + $0x20] sm:$0xff] }
  0x1a   : > { %2921 = vmatmul.mubr.msk.f32.gmra.mrb[2].mxu0 %vm440_vm0, %v418_v54  ;;  %v420_v60 = vld [vmem:[%s3609_s22 + $0x28] sm:$0xff]  ;;  %v3306_v61 = vld [vmem:[%s3596_s14] ss:$24 sps:$4 sm:$0xff]   ;;  %v421_v2 = vld [vmem:[%s3609_s22 + $0x30] sm:$0xff] }
  0x1b   : > { %1537 = vmatpush1.bf16.msra.mxu1 %v3275_v11  ;;  %1757 = vmatpush1.bf16.msra.mxu0 %v3666_v30  ;;  %v3311_v62 = vld [vmem:[%s4442_s4 + $0x104] ss:$8 sps:$4 sm:$0xff]   ;;  %v3309_v63 = vld [vmem:[%s4442_s4 + $0x100] ss:$8 sps:$4 sm:$0xff]   ;;  %v3805_v1 = vld [vmem:[%s4442_s4 + $0x290] ss:$8 sps:$4 sm:$0xff]  }
  0x1c   : > { %1538 = vmatprep.subr.bf16.mxu1 %v3276_v12  ;;  %1758 = vmatprep.subr.bf16.mxu0 %v3675_v32  ;;  %v3321_v0 = vld [vmem:[%s3596_s14 + $0x34] ss:$24 sps:$4 sm:$0xff]   ;;  %v422_v3 = vld [vmem:[%s3609_s22 + $0x38] sm:$0xff]  ;;  %v3824_v6 = vld [vmem:[%s4442_s4 + $0x2a0] ss:$8 sps:$4 sm:$0xff]  }
  0x1d   : > { %2923 = vmatprep.mubr.msk.f32.mxu0 %vm440_vm0, %v419_v59  ;;  %v3317_v4 = vld [vmem:[%s4442_s4 + $0x114] ss:$8 sps:$4 sm:$0xff]   ;;  %v3816_v5 = vld [vmem:[%s4442_s4 + $0x2a4] ss:$8 sps:$4 sm:$0xff]   ;;  %v3315_v7 = vld [vmem:[%s4442_s4 + $0x110] ss:$8 sps:$4 sm:$0xff]  }
  0x1e   : > { %2924 = vmatmul.mubr.msk.f32.gmra.mrb[4].mxu0 %vm440_vm0, %v420_v60  ;;  %v3832_v8 = vld [vmem:[%s4442_s4 + $0x2b4] ss:$8 sps:$4 sm:$0xff]   ;;  %v423_v9 = vld [vmem:[%s3609_s22 + $0x40] sm:$0xff]  ;;  %v3323_v10 = vld [vmem:[%s3596_s14 + $0x30] ss:$24 sps:$4 sm:$0xff]  }
  0x1f   : > { %1539 = vmatpush1.bf16.msra.mxu1 %v3278_v15  ;;  %1759 = vmatpush1.bf16.msra.mxu0 %v3684_v34  ;;  %v3326_v11 = vld [vmem:[%s4442_s4 + $0x124] ss:$8 sps:$4 sm:$0xff]   ;;  %v3324_v13 = vld [vmem:[%s4442_s4 + $0x120] ss:$8 sps:$4 sm:$0xff]   ;;  %v3849_v14 = vld [vmem:[%s4442_s4 + $0x2b0] ss:$8 sps:$4 sm:$0xff]  }
  0x20   : > { %1540 = vmatprep.subr.bf16.mxu1 %v3279_v18  ;;  %1760 = vmatprep.subr.bf16.mxu0 %v3693_v36  ;;  %v424_v12 = vld [vmem:[%s3609_s22 + $0x48] sm:$0xff]  ;;  %v425_v15 = vld [vmem:[%s3609_s22 + $0x50] sm:$0xff]  ;;  %v3336_v16 = vld [vmem:[%s3596_s14 + $0x64] ss:$24 sps:$4 sm:$0xff]  }
  0x21   : > { %2926 = vmatprep.mubr.msk.f32.mxu0 %vm440_vm0, %v421_v2  ;;  %v3332_v17 = vld [vmem:[%s4442_s4 + $0x134] ss:$8 sps:$4 sm:$0xff]   ;;  %v3861_v18 = vld [vmem:[%s4442_s4 + $0x2c4] ss:$8 sps:$4 sm:$0xff]   ;;  %v3866_v19 = vld [vmem:[%s4442_s4 + $0x2c0] ss:$8 sps:$4 sm:$0xff]  }
  0x22   : > { %2927 = vmatmul.mubr.msk.f32.gmra.mrb[6].mxu0 %vm440_vm0, %v422_v3  ;;  %v426_v22 = vld [vmem:[%s3609_s22 + $0x58] sm:$0xff]  ;;  %v3353_v53 = vld [vmem:[%s3596_s14 + $0x90] ss:$24 sps:$4 sm:$0xff]   ;;  %v3431_v59 = vld [vmem:[%s3596_s14 + $0x14] ss:$24 sps:$4 sm:$0xff]  }
  0x23   : > { %1541 = vmatpush1.bf16.msra.mxu1 %v3281_v23  ;;  %1761 = vmatpush1.bf16.msra.mxu0 %v3702_v38  ;;  %v3330_v23 = vld [vmem:[%s4442_s4 + $0x130] ss:$8 sps:$4 sm:$0xff]   ;;  %v3371_v3 = vld [vmem:[%s4442_s4 + $0x184] ss:$8 sps:$4 sm:$0xff]  }
  0x24   : > { %1542 = vmatprep.subr.bf16.mxu1 %v3282_v24  ;;  %1762 = vmatprep.subr.bf16.mxu0 %v3711_v40  ;;  %v3877_v24 = vld [vmem:[%s4442_s4 + $0x2d4] ss:$8 sps:$4 sm:$0xff]   ;;  %v3938_v60 = vld [vmem:[%s4442_s4 + $0x2f0] ss:$8 sps:$4 sm:$0xff]  }
  0x25   : > { %2929 = vmatprep.mubr.msk.f32.mxu0 %vm440_vm0, %v423_v9  ;;  %v430_v54 = vld [vmem:[%s3609_s22 + $0x78] sm:$0xff]  ;;  %v3381_v9 = vld [vmem:[%s3596_s14 + $0xf4] ss:$24 sps:$4 sm:$0xff]  }
  0x26   : > { %2930 = vmatmul.mubr.msk.f32.gmra.mrb[8].mxu0 %vm440_vm0, %v424_v12  ;;  %v3360_v2 = vld [vmem:[%s4442_s4 + $0x170] ss:$8 sps:$4 sm:$0xff]   ;;  %v3441_v12 = vld [vmem:[%s3596_s14 + $0x74] ss:$24 sps:$4 sm:$0xff]  }
  0x27   : > { %1543 = vmatpush1.bf16.msra.mxu1 %v3284_v27  ;;  %1763 = vmatpush1.bf16.msra.mxu0 %v3720_v42  ;;  %v427_v27 = vld [vmem:[%s3609_s22 + $0x60] sm:$0xff] }
  0x28   : > { %1544 = vmatprep.subr.bf16.mxu1 %v3285_v28  ;;  %1764 = vmatprep.subr.bf16.mxu0 %v3729_v44  ;;  %v3341_v28 = vld [vmem:[%s4442_s4 + $0x144] ss:$8 sps:$4 sm:$0xff]  }
  0x29   : > { %2932 = vmatprep.mubr.msk.f32.mxu0 %vm440_vm0, %v425_v15  ;;  %v3386_v15 = vld [vmem:[%s4442_s4 + $0x1a4] ss:$8 sps:$4 sm:$0xff]  }
  0x2a   : > { %2933 = vmatmul.mubr.msk.f32.gmra.mrb[10].mxu0 %vm440_vm0, %v426_v22  ;;  %v3396_v22 = vld [vmem:[%s3596_s14 + $0x124] ss:$24 sps:$4 sm:$0xff]  }
  0x2b   : > { %1545 = vmatpush1.bf16.msra.mxu1 %v3287_v31  ;;  %1765 = vmatpush1.bf16.msra.mxu0 %v3738_v46  ;;  %v3338_v31 = vld [vmem:[%s3596_s14 + $0x60] ss:$24 sps:$4 sm:$0xff]  }
  0x2c   : > { %1546 = vmatprep.subr.bf16.mxu1 %v3288_v33  ;;  %1766 = vmatprep.subr.bf16.mxu0 %v3747_v48  ;;  %v3339_v33 = vld [vmem:[%s4442_s4 + $0x140] ss:$8 sps:$4 sm:$0xff]  }
  0x2d   : > { %2935 = vmatprep.mubr.msk.f32.mxu0 %vm440_vm0, %v427_v27  ;;  %v3443_v27 = vld [vmem:[%s3596_s14 + $0x70] ss:$24 sps:$4 sm:$0xff]  }
  0x2f   : > { %1547 = vmatpush1.bf16.msra.mxu1 %v3290_v35  ;;  %1767 = vmatpush1.bf16.msra.mxu0 %v3759_v51  ;;  %v3893_v35 = vld [vmem:[%s4442_s4 + $0x2d0] ss:$8 sps:$4 sm:$0xff]  }
  0x30   : > { %1548 = vmatprep.subr.bf16.mxu1 %v3291_v37  ;;  %1768 = vmatprep.subr.bf16.mxu0 %v3764_v52  ;;  %v428_v37 = vld [vmem:[%s3609_s22 + $0x68] sm:$0xff] }
  0x31   : > { %2936 = vmatmul.mubr.msk.f32.gmra.mrb[12].mxu0 %vm440_vm0, %v428_v37  ;;  %v3398_v37 = vld [vmem:[%s3596_s14 + $0x120] ss:$24 sps:$4 sm:$0xff]  }
  0x33   : > { %1549 = vmatpush1.bf16.msra.mxu1 %v3293_v39  ;;  %1769 = vmatpush1.bf16.msra.mxu0 %v3781_v57  ;;  %v3351_v39 = vld [vmem:[%s3596_s14 + $0x94] ss:$24 sps:$4 sm:$0xff]  }
  0x34   : > { %1550 = vmatprep.subr.bf16.mxu1 %v3294_v41  ;;  %1770 = vmatprep.subr.bf16.mxu0 %v3787_v58  ;;  %v3347_v41 = vld [vmem:[%s4442_s4 + $0x154] ss:$8 sps:$4 sm:$0xff]  }
  0x37   : > { %1551 = vmatpush1.bf16.msra.mxu1 %v3296_v43  ;;  %1771 = vmatpush1.bf16.msra.mxu0 %v3805_v1  ;;  %v3905_v43 = vld [vmem:[%s4442_s4 + $0x2e4] ss:$8 sps:$4 sm:$0xff]  }
  0x38   : > { %1552 = vmatprep.subr.bf16.mxu1 %v3297_v45  ;;  %1772 = vmatprep.subr.bf16.mxu0 %v3816_v5  ;;  %v3345_v45 = vld [vmem:[%s4442_s4 + $0x150] ss:$8 sps:$4 sm:$0xff]  }
  0x3b   : > { %1553 = vmatpush1.bf16.msra.mxu1 %v3299_v47  ;;  %1773 = vmatpush1.bf16.msra.mxu0 %v3824_v6  ;;  %v3914_v47 = vld [vmem:[%s4442_s4 + $0x2e0] ss:$8 sps:$4 sm:$0xff]  }
  0x3c   : > { %1554 = vmatprep.subr.bf16.mxu1 %v3300_v49  ;;  %1774 = vmatprep.subr.bf16.mxu0 %v3832_v8  ;;  %v429_v49 = vld [vmem:[%s3609_s22 + $0x70] sm:$0xff] }
  0x3d   : > { %2938 = vmatprep.mubr.msk.f32.mxu0 %vm440_vm0, %v429_v49  ;;  %v3449_v49 = vld [vmem:[%s3596_s14 + $0xa0] ss:$24 sps:$4 sm:$0xff]  }
  0x3e   : > { %2939 = vmatmul.mubr.msk.f32.gmra.mrb[14].mxu0 %vm440_vm0, %v430_v54  ;;  %v3413_v54 = vld [vmem:[%s3596_s14 + $0x150] ss:$24 sps:$4 sm:$0xff]  }
  0x3f   : > { %1555 = vmatpush1.bf16.msra.mxu1 %v3302_v50  ;;  %1775 = vmatpush1.bf16.msra.mxu0 %v3849_v14  ;;  %v3356_v50 = vld [vmem:[%s4442_s4 + $0x164] ss:$8 sps:$4 sm:$0xff]  }
  0x40   : > { %1556 = vmatprep.subr.bf16.mxu1 %v3303_v55  ;;  %1776 = vmatprep.subr.bf16.mxu0 %v3861_v18  ;;  %v3927_v55 = vld [vmem:[%s4442_s4 + $0x2f4] ss:$8 sps:$4 sm:$0xff]  }
  0x41   : > { %1784 = vmatprep.mubr.bf16.mxu0 %v3431_v59  ;;  %v1922_v59 = vld [vmem:[%s4445_s7 + $0x88] sm:$0xff] }
  0x43   : > { %1557 = vmatpush1.bf16.msra.mxu1 %v3305_v56  ;;  %1777 = vmatpush1.bf16.msra.mxu0 %v3866_v19  ;;  %v3354_v56 = vld [vmem:[%s4442_s4 + $0x160] ss:$8 sps:$4 sm:$0xff]  }
  0x44   : > { %1639 = vmatprep.subr.bf16.mxu1 %v3311_v62  ;;  %1778 = vmatprep.subr.bf16.mxu0 %v3877_v24  ;;  %v3362_v62 = vld [vmem:[%s4442_s4 + $0x174] ss:$8 sps:$4 sm:$0xff]  }
  0x46   : > { %1559 = vmatmul.mubr.bf16.vlgmr.msra.gmra.mrb[0].mxu1 %v3306_v61  ;;  %v3366_v61 = vld [vmem:[%s3596_s14 + $0xc4] ss:$24 sps:$4 sm:$0xff]  }
  0x47   : > { %1640 = vmatpush1.bf16.msra.mxu1 %v3309_v63  ;;  %1568 = vmatprep.mubr.bf16.mxu1 %v3321_v0  ;;  %v3429_v63 = vld [vmem:[%s3596_s14 + $0x10] ss:$24 sps:$4 sm:$0xff]   ;;  %v3435_v0 = vld [vmem:[%s3596_s14 + $0x44] ss:$24 sps:$4 sm:$0xff]  }
  0x48   : > { %1641 = vmatprep.subr.bf16.mxu1 %v3317_v4  ;;  %1779 = vmatpush1.bf16.msra.mxu0 %v3893_v35  ;;  %v3368_v4 = vld [vmem:[%s3596_s14 + $0xc0] ss:$24 sps:$4 sm:$0xff]  }
  0x49   : > { %1780 = vmatprep.subr.bf16.mxu0 %v3905_v43 }
  0x4b   : > { %1642 = vmatpush1.bf16.msra.mxu1 %v3315_v7  ;;  %v3369_v7 = vld [vmem:[%s4442_s4 + $0x180] ss:$8 sps:$4 sm:$0xff]  }
  0x4c   : > { %1643 = vmatprep.subr.bf16.mxu1 %v3326_v11  ;;  %1781 = vmatpush1.bf16.msra.mxu0 %v3914_v47  ;;  %v3437_v11 = vld [vmem:[%s3596_s14 + $0x40] ss:$24 sps:$4 sm:$0xff]  }
  0x4d   : > { %1782 = vmatprep.subr.bf16.mxu0 %v3927_v55 }
  0x4e   : > { %1569 = vmatmul.mubr.bf16.gmra.mrb[4].mxu1 %v3323_v10  ;;  %v3377_v10 = vld [vmem:[%s4442_s4 + $0x194] ss:$8 sps:$4 sm:$0xff]  }
  0x4f   : > { %1644 = vmatpush1.bf16.msra.mxu1 %v3324_v13  ;;  %1578 = vmatprep.mubr.bf16.mxu1 %v3336_v16  ;;  %v3375_v13 = vld [vmem:[%s4442_s4 + $0x190] ss:$8 sps:$4 sm:$0xff]  }
  0x50   : > { %1645 = vmatprep.subr.bf16.mxu1 %v3332_v17  ;;  %1783 = vmatpush1.bf16.msra.mxu0 %v3938_v60  ;;  %v3383_v16 = vld [vmem:[%s3596_s14 + $0xf0] ss:$24 sps:$4 sm:$0xff]  }
  0x51   : > { %v3384_v17 = vld [vmem:[%s4442_s4 + $0x1a0] ss:$8 sps:$4 sm:$0xff]  }
  0x53   : > { %1646 = vmatpush1.bf16.msra.mxu1 %v3330_v23  ;;  %1785 = vmatmul.mubr.bf16.vlgmr.msra.gmra.mrb[16].mxu0 %v3429_v63  ;;  %v3392_v23 = vld [vmem:[%s4442_s4 + $0x1b4] ss:$8 sps:$4 sm:$0xff]   ;;  %v1906_v63 = vld [vmem:[%s4445_s7 + $0x8] sm:$0xff] }
  0x54   : > { %1647 = vmatprep.subr.bf16.mxu1 %v3341_v28  ;;  %1794 = vmatprep.mubr.bf16.mxu0 %v3435_v0  ;;  %v3447_v28 = vld [vmem:[%s3596_s14 + $0xa4] ss:$24 sps:$4 sm:$0xff]   ;;  %v1923_v0 = vld [vmem:[%s4445_s7 + $0x90] sm:$0xff] }
  0x56   : > { %1579 = vmatmul.mubr.bf16.gmra.mrb[8].mxu1 %v3338_v31  ;;  %v3390_v31 = vld [vmem:[%s4442_s4 + $0x1b0] ss:$8 sps:$4 sm:$0xff]  }
  0x57   : > { %1648 = vmatpush1.bf16.msra.mxu1 %v3339_v33  ;;  %1588 = vmatprep.mubr.bf16.mxu1 %v3351_v39  ;;  %v3401_v33 = vld [vmem:[%s4442_s4 + $0x1c4] ss:$8 sps:$4 sm:$0xff]   ;;  %v3399_v39 = vld [vmem:[%s4442_s4 + $0x1c0] ss:$8 sps:$4 sm:$0xff]  }
  0x58   : > { %1649 = vmatprep.subr.bf16.mxu1 %v3347_v41  ;;  %v3411_v41 = vld [vmem:[%s3596_s14 + $0x154] ss:$24 sps:$4 sm:$0xff]  }
  0x5b   : > { %1650 = vmatpush1.bf16.msra.mxu1 %v3345_v45  ;;  %1795 = vmatmul.mubr.bf16.gmra.mrb[20].mxu0 %v3437_v11  ;;  %v3407_v45 = vld [vmem:[%s4442_s4 + $0x1d4] ss:$8 sps:$4 sm:$0xff]   ;;  %v3414_v11 = vld [vmem:[%s4442_s4 + $0x1e0] ss:$8 sps:$4 sm:$0xff]  }
  0x5c   : > { %1651 = vmatprep.subr.bf16.mxu1 %v3356_v50  ;;  %1804 = vmatprep.mubr.bf16.mxu0 %v3441_v12  ;;  %v3405_v50 = vld [vmem:[%s4442_s4 + $0x1d0] ss:$8 sps:$4 sm:$0xff]   ;;  %v3428_v12 = vld [vmem:[%s3596_s14 + $0xc] ss:$24 sps:$4 sm:$0xff]  }
  0x5e   : > { %1589 = vmatmul.mubr.bf16.gmra.mrb[12].mxu1 %v3353_v53  ;;  %v3416_v53 = vld [vmem:[%s4442_s4 + $0x1e4] ss:$8 sps:$4 sm:$0xff]  }
  0x5f   : > { %1652 = vmatpush1.bf16.msra.mxu1 %v3354_v56  ;;  %1598 = vmatprep.mubr.bf16.mxu1 %v3366_v61  ;;  %v1921_v56 = vld [vmem:[%s4445_s7 + $0x80] sm:$0xff] }
  0x60   : > { %1653 = vmatprep.subr.bf16.mxu1 %v3362_v62  ;;  %v1905_v61 = vld [vmem:[%s4445_s7] sm:$0xff]  ;;  %v3041_v62 = vpack.c.bf16 %v1922_v59, %v1921_v56  ;;  %v3459_v59 = vld [vmem:[%s3596_s14 + $0x15c] ss:$24 sps:$4 sm:$0xff]  }
  0x62   : > { %3042 = vmatprep.subr.bf16.mxu0 %v3041_v62 }
  0x63   : > { %1654 = vmatpush1.bf16.msra.mxu1 %v3360_v2  ;;  %1805 = vmatmul.mubr.bf16.gmra.mrb[24].mxu0 %v3443_v27  ;;  %v1924_v2 = vld [vmem:[%s4445_s7 + $0x98] sm:$0xff] }
  0x64   : > { %1655 = vmatprep.subr.bf16.mxu1 %v3371_v3  ;;  %1814 = vmatprep.mubr.bf16.mxu0 %v3447_v28  ;;  %v3043_v3 = vpack.c.bf16 %v1906_v63, %v1905_v61  ;;  %v3420_v27 = vld [vmem:[%s4442_s4 + $0x1f0] ss:$8 sps:$4 sm:$0xff]   ;;  %v1918_v61 = vld [vmem:[%s4445_s7 + $0x68] sm:$0xff] }
  0x65   : > { %v3473_v63 = vld [vmem:[%s3596_s14 + $0x160] ss:$24 sps:$4 sm:$0xff]  }
  0x66   : > { %1599 = vmatmul.mubr.bf16.gmra.mrb[16].mxu1 %v3368_v4  ;;  %v3045_v4 = vpack.c.bf16 %v1924_v2, %v1923_v0  ;;  %3044 = vmatpush3.bf16.msra.mxu0 %v3043_v3  ;;  %v1935_v0 = vld [vmem:[%s4445_s7 + $0xf0] sm:$0xff]  ;;  %v1936_v2 = vld [vmem:[%s4445_s7 + $0xf8] sm:$0xff] }
  0x67   : > { %1656 = vmatpush1.bf16.msra.mxu1 %v3369_v7  ;;  %1608 = vmatprep.mubr.bf16.mxu1 %v3381_v9  ;;  %v1907_v7 = vld [vmem:[%s4445_s7 + $0x10] sm:$0xff]  ;;  %v1908_v9 = vld [vmem:[%s4445_s7 + $0x18] sm:$0xff]  ;;  %v3069_v3 = vpack.c.bf16 %v1936_v2, %v1935_v0 }
  0x68   : > { %1657 = vmatprep.subr.bf16.mxu1 %v3377_v10  ;;  %v1925_v10 = vld [vmem:[%s4445_s7 + $0xa0] sm:$0xff]  ;;  %3046 = vmatprep.subr.bf16.mxu0 %v3045_v4  ;;  %v1919_v4 = vld [vmem:[%s4445_s7 + $0x70] sm:$0xff] }
  0x6b   : > { %1658 = vmatpush1.bf16.msra.mxu1 %v3375_v13  ;;  %1815 = vmatmul.mubr.bf16.gmra.mrb[28].mxu0 %v3449_v49  ;;  %v1926_v13 = vld [vmem:[%s4445_s7 + $0xa8] sm:$0xff] }
  0x6c   : > { %1659 = vmatprep.subr.bf16.mxu1 %v3386_v15  ;;  %v3422_v15 = vld [vmem:[%s4442_s4 + $0x1f4] ss:$8 sps:$4 sm:$0xff]   ;;  %v1914_v49 = vld [vmem:[%s4445_s7 + $0x48] sm:$0xff] }
  0x6e   : > { %1609 = vmatmul.mubr.bf16.gmra.mrb[20].mxu1 %v3383_v16  ;;  %v3047_v16 = vpack.c.bf16 %v1908_v9, %v1907_v7  ;;  %v1920_v7 = vld [vmem:[%s4445_s7 + $0x78] sm:$0xff] }
  0x6f   : > { %1660 = vmatpush1.bf16.msra.mxu1 %v3384_v17  ;;  %1618 = vmatprep.mubr.bf16.mxu1 %v3396_v22  ;;  %v3049_v17 = vpack.c.bf16 %v1926_v13, %v1925_v10  ;;  %v1909_v22 = vld [vmem:[%s4445_s7 + $0x20] sm:$0xff]  ;;  %v3071_v9 = vpack.c.bf16 %v1920_v7, %v1919_v4  ;;  %v1898_v13 = vld [vmem:[%s4444_s6 + $0x8] sm:$0xff] }
  0x70   : > { %1661 = vmatprep.subr.bf16.mxu1 %v3392_v23  ;;  %v1910_v23 = vld [vmem:[%s4445_s7 + $0x28] sm:$0xff]  ;;  %3048 = vmatpush3.bf16.msra.mxu0 %v3047_v16  ;;  %v1901_v4 = vld [vmem:[%s4444_s6 + $0x20] sm:$0xff] }
  0x71   : > { %v3051_v28 = vpack.c.bf16 %v1910_v23, %v1909_v22  ;;  %3050 = vmatprep.subr.bf16.mxu0 %v3049_v17  ;;  %v1902_v7 = vld [vmem:[%s4444_s6 + $0x28] sm:$0xff] }
  0x73   : > { %1662 = vmatpush1.bf16.msra.mxu1 %v3390_v31  ;;  %v3426_v31 = vld [vmem:[%s3596_s14 + $0x8] ss:$24 sps:$4 sm:$0xff]  }
  0x74   : > { %1663 = vmatprep.subr.bf16.mxu1 %v3401_v33  ;;  %v3432_v33 = vld [vmem:[%s3596_s14 + $0x3c] ss:$24 sps:$4 sm:$0xff]   ;;  %3052 = vmatpush3.bf16.msra.mxu0 %v3051_v28 }
  0x76   : > { %1619 = vmatmul.mubr.bf16.gmra.mrb[24].mxu1 %v3398_v37  ;;  %v3434_v37 = vld [vmem:[%s3596_s14 + $0x38] ss:$24 sps:$4 sm:$0xff]  }
  0x77   : > { %1664 = vmatpush1.bf16.msra.mxu1 %v3399_v39  ;;  %1628 = vmatprep.mubr.bf16.mxu1 %v3411_v41  ;;  %v3438_v39 = vld [vmem:[%s3596_s14 + $0x6c] ss:$24 sps:$4 sm:$0xff]  }
  0x78   : > { %1665 = vmatprep.subr.bf16.mxu1 %v3407_v45  ;;  %v1929_v41 = vld [vmem:[%s4445_s7 + $0xc0] sm:$0xff]  ;;  %v1930_v45 = vld [vmem:[%s4445_s7 + $0xc8] sm:$0xff] }
  0x7b   : > { %1666 = vmatpush1.bf16.msra.mxu1 %v3405_v50  ;;  %v3453_v50 = vld [vmem:[%s3596_s14 + $0xfc] ss:$24 sps:$4 sm:$0xff]  }
  0x7c   : > { %1667 = vmatprep.subr.bf16.mxu1 %v3416_v53 }
  0x7e   : > { %1629 = vmatmul.mubr.bf16.gmra.mrb[28].mxu1 %v3413_v54  ;;  %v3455_v54 = vld [vmem:[%s3596_s14 + $0xf8] ss:$24 sps:$4 sm:$0xff]  }
  0x7f   : > { %1668 = vmatpush1.bf16.msra.mxu1 %v3414_v11  ;;  %1671 = vmatprep.mubr.bf16.mxu1 %v3428_v12  ;;  %v1897_v12 = vld [vmem:[%s4444_s6] sm:$0xff] }
  0x80   : > { %1669 = vmatprep.subr.bf16.mxu1 %v3422_v15  ;;  %v4174_v15 = vpack.c.bf16 %v1898_v13, %v1897_v12 }
  0x83   : > { %1670 = vmatpush1.bf16.msra.mxu1 %v3420_v27 }
  0x84   : > { %3121 = vmatprep.subr.bf16.mxu1 %v3628_v21  ;;  %v3440_v21 = vld [vmem:[%s3596_s14 + $0x68] ss:$24 sps:$4 sm:$0xff]  }
  0x86   : > { %1672 = vmatmul.mubr.bf16.vlgmr.msra.gmra.mrb[0].mxu1 %v3426_v31 }
  0x87   : > { %3137 = vmatpush1.bf16.msra.mxu1 %v3622_v20  ;;  %1681 = vmatprep.mubr.bf16.mxu1 %v3432_v33  ;;  %v3444_v20 = vld [vmem:[%s3596_s14 + $0x9c] ss:$24 sps:$4 sm:$0xff]  }
  0x88   : > { %3122 = vmatprep.subr.bf16.mxu1 %v3642_v25  ;;  %v1927_v25 = vld [vmem:[%s4445_s7 + $0xb0] sm:$0xff] }
  0x8b   : > { %3138 = vmatpush1.bf16.msra.mxu1 %v3648_v26  ;;  %v1928_v26 = vld [vmem:[%s4445_s7 + $0xb8] sm:$0xff] }
  0x8c   : > { %3123 = vmatprep.subr.bf16.mxu1 %v3660_v29  ;;  %v3053_v29 = vpack.c.bf16 %v1928_v26, %v1927_v25 }
  0x8e   : > { %1682 = vmatmul.mubr.bf16.gmra.mrb[4].mxu1 %v3434_v37  ;;  %3054 = vmatprep.subr.bf16.mxu0 %v3053_v29 }
  0x8f   : > { %3139 = vmatpush1.bf16.msra.mxu1 %v3666_v30  ;;  %1691 = vmatprep.mubr.bf16.mxu1 %v3438_v39  ;;  %v1911_v30 = vld [vmem:[%s4445_s7 + $0x30] sm:$0xff] }
  0x90   : > { %3124 = vmatprep.subr.bf16.mxu1 %v3675_v32  ;;  %v1912_v32 = vld [vmem:[%s4445_s7 + $0x38] sm:$0xff] }
  0x93   : > { %3140 = vmatpush1.bf16.msra.mxu1 %v3684_v34  ;;  %v3055_v34 = vpack.c.bf16 %v1912_v32, %v1911_v30 }
  0x94   : > { %3125 = vmatprep.subr.bf16.mxu1 %v3693_v36  ;;  %v3446_v36 = vld [vmem:[%s3596_s14 + $0x98] ss:$24 sps:$4 sm:$0xff]  }
  0x95   : > { %3056 = vmatpush3.bf16.msra.mxu0 %v3055_v34 }
  0x96   : > { %1692 = vmatmul.mubr.bf16.gmra.mrb[8].mxu1 %v3440_v21 }
  0x97   : > { %3141 = vmatpush1.bf16.msra.mxu1 %v3702_v38  ;;  %1701 = vmatprep.mubr.bf16.mxu1 %v3444_v20  ;;  %v3450_v38 = vld [vmem:[%s3596_s14 + $0xcc] ss:$24 sps:$4 sm:$0xff]  }
  0x98   : > { %3126 = vmatprep.subr.bf16.mxu1 %v3711_v40  ;;  %v3057_v40 = vpack.c.bf16 %v1930_v45, %v1929_v41 }
  0x9a   : > { %3058 = vmatprep.subr.bf16.mxu0 %v3057_v40 }
  0x9b   : > { %3142 = vmatpush1.bf16.msra.mxu1 %v3720_v42  ;;  %v3452_v42 = vld [vmem:[%s3596_s14 + $0xc8] ss:$24 sps:$4 sm:$0xff]  }
  0x9c   : > { %3127 = vmatprep.subr.bf16.mxu1 %v3729_v44  ;;  %v1913_v44 = vld [vmem:[%s4445_s7 + $0x40] sm:$0xff] }
  0x9d   : > { %v3059_v53 = vpack.c.bf16 %v1914_v49, %v1913_v44 }
  0x9e   : > { %1702 = vmatmul.mubr.bf16.gmra.mrb[12].mxu1 %v3446_v36 }
  0x9f   : > { %3143 = vmatpush1.bf16.msra.mxu1 %v3738_v46  ;;  %1711 = vmatprep.mubr.bf16.mxu1 %v3450_v38  ;;  %v1931_v46 = vld [vmem:[%s4445_s7 + $0xd0] sm:$0xff] }
  0xa0   : > { %3128 = vmatprep.subr.bf16.mxu1 %v3747_v48  ;;  %3060 = vmatpush3.bf16.msra.mxu0 %v3059_v53  ;;  %v1932_v48 = vld [vmem:[%s4445_s7 + $0xd8] sm:$0xff] }
  0xa3   : > { %3144 = vmatpush1.bf16.msra.mxu1 %v3759_v51  ;;  %v3061_v51 = vpack.c.bf16 %v1932_v48, %v1931_v46 }
  0xa4   : > { %3129 = vmatprep.subr.bf16.mxu1 %v3764_v52  ;;  %v3456_v52 = vld [vmem:[%s3596_s14 + $0x12c] ss:$24 sps:$4 sm:$0xff]  }
  0xa5   : > { %3062 = vmatprep.subr.bf16.mxu0 %v3061_v51 }
  0xa6   : > { %1712 = vmatmul.mubr.bf16.gmra.mrb[16].mxu1 %v3452_v42 }
  0xa7   : > { %3145 = vmatpush1.bf16.msra.mxu1 %v3781_v57  ;;  %1721 = vmatprep.mubr.bf16.mxu1 %v3453_v50  ;;  %v1915_v57 = vld [vmem:[%s4445_s7 + $0x50] sm:$0xff]  ;;  %v796_v50 = vlaneseq }
  0xa8   : > { %3130 = vmatprep.subr.bf16.mxu1 %v3787_v58  ;;  %v1916_v58 = vld [vmem:[%s4445_s7 + $0x58] sm:$0xff] }
  0xa9   : > { %v3063_v56 = vpack.c.bf16 %v1916_v58, %v1915_v57  ;;  %v797_v48 = vshrl.u32 %v796_v50, 7  ;;  %v794_v57 = vld [vmem:[%s4443_s5] sm:$0x3] }
  0xab   : > { %3146 = vmatpush1.bf16.msra.mxu1 %v3805_v1  ;;  %3064 = vmatpush3.bf16.msra.mxu0 %v3063_v56  ;;  %v3458_v1 = vld [vmem:[%s3596_s14 + $0x128] ss:$24 sps:$4 sm:$0xff]   ;;  %v802_v58 = vsub.s32 1, %v797_v48 }
  0xac   : > { %3131 = vmatprep.subr.bf16.mxu1 %v3816_v5  ;;  %v3461_v5 = vld [vmem:[%s3596_s14 + $0x158] ss:$24 sps:$4 sm:$0xff]  }
  0xae   : > { %1722 = vmatmul.mubr.bf16.gmra.mrb[20].mxu1 %v3455_v54 }
  0xaf   : > { %3147 = vmatpush1.bf16.msra.mxu1 %v3824_v6  ;;  %1731 = vmatprep.mubr.bf16.mxu1 %v3456_v52  ;;  %v3464_v6 = vld [vmem:[%s3596_s14 + $0xd4] ss:$24 sps:$4 sm:$0xff]   ;;  %v798_v52 = vsub.s32 0, %v797_v48  ;;  %v3081_v48 = vpack.c.bf16 %v1902_v7, %v1901_v4 }
  0xb0   : > { %3132 = vmatprep.subr.bf16.mxu1 %v3832_v8  ;;  %v3462_v8 = vld [vmem:[%s3596_s14 + $0xd0] ss:$24 sps:$4 sm:$0xff]  }
  0xb1   : > { %v4224_v56 = vrot.slane %v794_v57, %v798_v52 }
  0xb3   : > { %3148 = vmatpush1.bf16.msra.mxu1 %v3849_v14  ;;  %v3465_v14 = vld [vmem:[%s3596_s14 + $0x104] ss:$24 sps:$4 sm:$0xff]  }
  0xb4   : > { %3133 = vmatprep.subr.bf16.mxu1 %v3861_v18  ;;  %v3467_v18 = vld [vmem:[%s3596_s14 + $0x100] ss:$24 sps:$4 sm:$0xff]  }
  0xb6   : > { %1732 = vmatmul.mubr.bf16.gmra.mrb[24].mxu1 %v3458_v1  ;;  %v4226_v1 = vrot.slane %v794_v57, %v802_v58  ;;  %v1903_v58 = vld [vmem:[%s4444_s6 + $0x30] sm:$0xff] }
  0xb7   : > { %3149 = vmatpush1.bf16.msra.mxu1 %v3866_v19  ;;  %1741 = vmatprep.mubr.bf16.mxu1 %v3459_v59  ;;  %v3468_v19 = vld [vmem:[%s3596_s14 + $0x134] ss:$24 sps:$4 sm:$0xff]  }
  0xb8   : > { %3134 = vmatprep.subr.bf16.mxu1 %v3877_v24  ;;  %v3470_v24 = vld [vmem:[%s3596_s14 + $0x130] ss:$24 sps:$4 sm:$0xff]  }
  0xbb   : > { %3150 = vmatpush1.bf16.msra.mxu1 %v3893_v35  ;;  %v3471_v35 = vld [vmem:[%s3596_s14 + $0x164] ss:$24 sps:$4 sm:$0xff]  }
  0xbc   : > { %3135 = vmatprep.subr.bf16.mxu1 %v3905_v43  ;;  %v1933_v43 = vld [vmem:[%s4445_s7 + $0xe0] sm:$0xff] }
  0xbe   : > { %1742 = vmatmul.mubr.bf16.gmra.mrb[28].mxu1 %v3461_v5 }
  0xbf   : > { %3151 = vmatpush1.bf16.msra.mxu1 %v3914_v47  ;;  %1824 = vmatprep.mubr.bf16.mxu1 %v3464_v6  ;;  %v1934_v47 = vld [vmem:[%s4445_s7 + $0xe8] sm:$0xff] }
  0xc0   : > { %3136 = vmatprep.subr.bf16.mxu1 %v3927_v55  ;;  %v3065_v55 = vpack.c.bf16 %v1934_v47, %v1933_v43  ;;  %v1899_v47 = vld [vmem:[%s4444_s6 + $0x10] sm:$0xff] }
  0xc2   : > { %3066 = vmatprep.subr.bf16.mxu0 %v3065_v55  ;;  %v1900_v55 = vld [vmem:[%s4444_s6 + $0x18] sm:$0xff] }
  0xc3   : > { %3152 = vmatpush1.bf16.msra.mxu1 %v3938_v60  ;;  %v1917_v60 = vld [vmem:[%s4445_s7 + $0x60] sm:$0xff]  ;;  %v3077_v0 = vpack.c.bf16 %v1900_v55, %v1899_v47 }
  0xc4   : > { %v3067_v62 = vpack.c.bf16 %v1918_v61, %v1917_v60 }
  0xc6   : > { %1825 = vmatmul.mubr.bf16.vlgmr.msra.gmra.mrb[16].mxu1 %v3462_v8  ;;  %3068 = vmatpush3.bf16.msra.mxu0 %v3067_v62 }
  0xc7   : > { %1834 = vmatprep.mubr.bf16.mxu1 %v3465_v14  ;;  %3070 = vmatprep.subr.bf16.mxu0 %v3069_v3 }
  0xca   : > { %3072 = vmatpush3.bf16.msra.mxu0 %v3071_v9 }
  0xcb   : > { %3074 = vmatprep.subr.bf16.mxu0 %v4174_v15 }
  0xce   : > { %1835 = vmatmul.mubr.bf16.gmra.mrb[20].mxu1 %v3467_v18 }
  0xcf   : > { %1844 = vmatprep.mubr.bf16.mxu1 %v3468_v19 }
  0xd6   : > { %1845 = vmatmul.mubr.bf16.gmra.mrb[24].mxu1 %v3470_v24 }
  0xd7   : > { %1854 = vmatprep.mubr.bf16.mxu1 %v3471_v35 }
  0xde   : > { %1855 = vmatmul.mubr.bf16.gmra.mrb[28].mxu1 %v3473_v63 }
  0xe5   : > { %v4164_v10 = vpop.f32.mrb[0].mxu0 }
  0xe6   : > { %v4166_v11 = vpop.f32.mrb[1].mxu0 }
  0xed   : > { %v4177_v16 = vpop.f32.mrb[2].mxu0 }
  0xee   : > { %v4179_v17 = vpop.f32.mrb[3].mxu0 }
  0xf1   : > { %v4181_v22 = vpop.f32.mrb[4].mxu0 }
  0xf2   : > { %v4183_v23 = vpop.f32.mrb[5].mxu0 }
  0xf5   : > { %v4185_v27 = vpop.f32.mrb[6].mxu0 }
  0xf6   : > { %v4187_v28 = vpop.f32.mrb[7].mxu0 }
  0xf9   : > { %v4189_v31 = vpop.f32.mrb[8].mxu0 }
  0xfa   : > { %v4191_v33 = vpop.f32.mrb[9].mxu0 }
  0xfd   : > { %v4193_v37 = vpop.f32.mrb[10].mxu0 }
  0xfe   : > { %v4195_v39 = vpop.f32.mrb[11].mxu0 }
 0x104   : > { %v4197_v21 = vpop.f32.mrb[12].mxu0 }
 0x105   : > { %v4199_v20 = vpop.f32.mrb[13].mxu0 }
 0x111   : > { %v4201_v25 = vpop.f32.mrb[14].mxu0 }
 0x112   : > { %v4203_v26 = vpop.f32.mrb[15].mxu0 }
 0x126   : > { %v1786_v29 = vpop.f32.mrb[16].mxu0 }
 0x127   : > { %v1788_v30 = vpop.f32.mrb[17].mxu0 }
 0x128   : > { %v1790_v32 = vpop.f32.mrb[18].mxu0 }
 0x129   : > { %v1792_v34 = vpop.f32.mrb[19].mxu0 }
 0x12e   : > { %v1796_v36 = vpop.f32.mrb[20].mxu0 }
 0x12f   : > { %v1798_v38 = vpop.f32.mrb[21].mxu0 }
 0x130   : > { %v1800_v41 = vpop.f32.mrb[22].mxu0 }
 0x131   : > { %v1802_v45 = vpop.f32.mrb[23].mxu0 }
 0x136   : > { %v4205_v40 = vpop.f32.mrb[24].mxu0 }
 0x137   : > { %v4207_v42 = vpop.f32.mrb[25].mxu0 }
 0x138   : > { %v4209_v44 = vpop.f32.mrb[26].mxu0 }
 0x139   : > { %v4211_v49 = vpop.f32.mrb[27].mxu0 }
 0x13e   : > { %v4213_v53 = vpop.f32.mrb[28].mxu0 }
 0x13f   : > { %v4215_v46 = vpop.f32.mrb[29].mxu0 }
 0x140   : > { %v4217_v51 = vpop.f32.mrb[30].mxu0 }
 0x141   : > { %v4219_v54 = vpop.f32.mrb[31].mxu0 }
 0x159   : > { %v1673_v59 = vpop.f32.mrb[0].mxu1 }
 0x15a   : > { %v3153_v5 = vadd.f32 %v1673_v59, %v4224_v56  ;;  %v1675_v6 = vpop.f32.mrb[1].mxu1  ;;  %v1904_v59 = vld [vmem:[%s4444_s6 + $0x38] sm:$0xff] }
 0x15b   : > { %v3155_v8 = vadd.f32 %v1675_v6, %v4226_v1  ;;  %v1677_v14 = vpop.f32.mrb[2].mxu1 }
 0x15c   : > { %v3157_v18 = vadd.f32 %v1677_v14, %v4224_v56  ;;  %v3154_v19 = vadd.f32 %v3153_v5, %v1786_v29  ;;  %v1679_v24 = vpop.f32.mrb[3].mxu1 }
 0x15d   : > { %v3159_v35 = vadd.f32 %v1679_v24, %v4226_v1  ;;  %v3156_v43 = vadd.f32 %v3155_v8, %v1788_v30  ;;  %v3085_v8 = vpack.c.bf16 %v1904_v59, %v1903_v58 }
 0x15e   : > { %v3158_v60 = vadd.f32 %v3157_v18, %v1790_v32  ;;  %v1865_v63 = vmax.f32 %v3154_v19, 0.0 }
 0x15f   : > { %v1866_v61 = vmax.f32 %v3156_v43, 0.0  ;;  %v3160_v62 = vadd.f32 %v3159_v35, %v1792_v34 }
 0x160   : > { %v1867_v30 = vmax.f32 %v3158_v60, 0.0 }
 0x161   : > { %v1868_v2 = vmax.f32 %v3160_v62, 0.0  ;;  %v1683_v3 = vpop.f32.mrb[4].mxu1  ;;  %2001 = vmatprep.mubr.f32.mxu0 %v1866_v61 }
 0x162   : > { %v3161_v9 = vadd.f32 %v1683_v3, %v4224_v56  ;;  %v1685_v12 = vpop.f32.mrb[5].mxu1  ;;  %2002 = vmatmul.mubr.f32.vlgmr.msra.gmra.mrb[32].mxu0 %v1865_v63 }
 0x163   : > { %v3163_v13 = vadd.f32 %v1685_v12, %v4226_v1  ;;  %v1687_v29 = vpop.f32.mrb[6].mxu1  ;;  %2006 = vmatprep.mubr.f32.mxu0 %v1868_v2  ;;  %3076 = vmatpush3.bf16.msra.mxu0 %v4174_v15 }
 0x164   : > { %v3165_v32 = vadd.f32 %v1687_v29, %v4224_v56  ;;  %v3162_v34 = vadd.f32 %v3161_v9, %v1796_v36  ;;  %v1689_v50 = vpop.f32.mrb[7].mxu1  ;;  %3078 = vmatprep.subr.bf16.mxu0 %v3077_v0 }
 0x165   : > { %v3167_v52 = vadd.f32 %v1689_v50, %v4226_v1  ;;  %v3164_v57 = vadd.f32 %v3163_v13, %v1798_v38 }
 0x166   : > { %v3166_v5 = vadd.f32 %v3165_v32, %v1800_v41  ;;  %2007 = vmatmul.mubr.f32.gmra.mrb[34].mxu0 %v1867_v30  ;;  %v1869_v36 = vmax.f32 %v3162_v34, 0.0 }
 0x167   : > { %v1870_v15 = vmax.f32 %v3164_v57, 0.0  ;;  %v3168_v6 = vadd.f32 %v3167_v52, %v1802_v45  ;;  %3080 = vmatpush3.bf16.msra.mxu0 %v3077_v0 }
 0x168   : > { %3082 = vmatprep.subr.bf16.mxu0 %v3081_v48  ;;  %v1871_v41 = vmax.f32 %v3166_v5, 0.0 }
 0x169   : > { %v1872_v14 = vmax.f32 %v3168_v6, 0.0  ;;  %v1693_v18 = vpop.f32.mrb[8].mxu1  ;;  %2011 = vmatprep.mubr.f32.mxu0 %v1870_v15 }
 0x16a   : > { %v3169_v38 = vadd.f32 %v1693_v18, %v4224_v56  ;;  %v1695_v19 = vpop.f32.mrb[9].mxu1  ;;  %2012 = vmatmul.mubr.f32.gmra.mrb[36].mxu0 %v1869_v36 }
 0x16b   : > { %v3171_v24 = vadd.f32 %v1695_v19, %v4226_v1  ;;  %v1697_v35 = vpop.f32.mrb[10].mxu1  ;;  %2016 = vmatprep.mubr.f32.mxu0 %v1872_v14  ;;  %3084 = vmatpush3.bf16.msra.mxu0 %v3081_v48 }
 0x16c   : > { %v3173_v43 = vadd.f32 %v1697_v35, %v4224_v56  ;;  %v3170_v45 = vadd.f32 %v3169_v38, %v4205_v40  ;;  %v1699_v47 = vpop.f32.mrb[11].mxu1  ;;  %3086 = vmatprep.subr.bf16.mxu0 %v3085_v8 }
 0x16d   : > { %v3175_v55 = vadd.f32 %v1699_v47, %v4226_v1  ;;  %v3172_v60 = vadd.f32 %v3171_v24, %v4207_v42 }
 0x16e   : > { %v3174_v61 = vadd.f32 %v3173_v43, %v4209_v44  ;;  %2017 = vmatmul.mubr.f32.gmra.mrb[38].mxu0 %v1871_v41  ;;  %v1873_v0 = vmax.f32 %v3170_v45, 0.0 }
 0x16f   : > { %v1874_v62 = vmax.f32 %v3172_v60, 0.0  ;;  %v3176_v63 = vadd.f32 %v3175_v55, %v4211_v49  ;;  %3088 = vmatpush3.bf16.msra.mxu0 %v3085_v8 }
 0x170   : > { %v1875_v42 = vmax.f32 %v3174_v61, 0.0 }
 0x171   : > { %v1876_v2 = vmax.f32 %v3176_v63, 0.0  ;;  %v1703_v3 = vpop.f32.mrb[12].mxu1  ;;  %2021 = vmatprep.mubr.f32.mxu0 %v1874_v62 }
 0x172   : > { %v3177_v4 = vadd.f32 %v1703_v3, %v4224_v56  ;;  %v1705_v40 = vpop.f32.mrb[13].mxu1  ;;  %2022 = vmatmul.mubr.f32.gmra.mrb[40].mxu0 %v1873_v0 }
 0x173   : > { %v3179_v7 = vadd.f32 %v1705_v40, %v4226_v1  ;;  %v1707_v9 = vpop.f32.mrb[14].mxu1  ;;  %2026 = vmatprep.mubr.f32.mxu0 %v1876_v2 }
 0x174   : > { %v3181_v44 = vadd.f32 %v1707_v9, %v4224_v56  ;;  %v3178_v12 = vadd.f32 %v3177_v4, %v4213_v53  ;;  %v1709_v13 = vpop.f32.mrb[15].mxu1 }
 0x175   : > { %v3183_v49 = vadd.f32 %v1709_v13, %v4226_v1  ;;  %v3180_v29 = vadd.f32 %v3179_v7, %v4215_v46 }
 0x176   : > { %v3182_v30 = vadd.f32 %v3181_v44, %v4217_v51  ;;  %2027 = vmatmul.mubr.f32.gmra.mrb[42].mxu0 %v1875_v42  ;;  %v1877_v50 = vmax.f32 %v3178_v12, 0.0 }
 0x177   : > { %v1878_v32 = vmax.f32 %v3180_v29, 0.0  ;;  %v3184_v34 = vadd.f32 %v3183_v49, %v4219_v54 }
 0x178   : > { %v1879_v52 = vmax.f32 %v3182_v30, 0.0 }
 0x179   : > { %v1880_v48 = vmax.f32 %v3184_v34, 0.0  ;;  %2031 = vmatprep.mubr.f32.mxu0 %v1878_v32  ;;  %v2578_v32 = vld [vmem:[%s4441_s3] ss:$0 sm:$0xff] }
 0x17a   : > { %2032 = vmatmul.mubr.f32.gmra.mrb[44].mxu0 %v1877_v50 }
 0x17b   : > { %2036 = vmatprep.mubr.f32.mxu0 %v1880_v48 }
 0x17e   : > { %2037 = vmatmul.mubr.f32.gmra.mrb[46].mxu0 %v1879_v52 }
 0x199   : > { %v1826_v57 = vpop.f32.mrb[16].mxu1 }
 0x19a   : > { %v3185_v53 = vadd.f32 %v1826_v57, %v4224_v56  ;;  %v1828_v58 = vpop.f32.mrb[17].mxu1 }
 0x19b   : > { %v3186_v59 = vadd.f32 %v1828_v58, %v4226_v1  ;;  %v1830_v46 = vpop.f32.mrb[18].mxu1 }
 0x19c   : > { %v1832_v5 = vpop.f32.mrb[19].mxu1  ;;  %v1881_v6 = vmax.f32 %v3185_v53, 0.0  ;;  %v3187_v54 = vadd.f32 %v1830_v46, %v4224_v56  ;;  %v556_v53 = vadd.f32 %v2578_v32, %v4166_v11  ;;  %v576_v11 = vadd.f32 %v2578_v32, %v4183_v23 }
 0x19d   : > { %v1882_v51 = vmax.f32 %v3186_v59, 0.0  ;;  %v3188_v15 = vadd.f32 %v1832_v5, %v4226_v1  ;;  %v561_v59 = vadd.f32 %v4164_v10, %v2578_v32  ;;  %v581_v10 = vadd.f32 %v4181_v22, %v2578_v32 }
 0x19e   : > { %v1883_v14 = vmax.f32 %v3187_v54, 0.0  ;;  %v634_v5 = vmax.f32 %v556_v53, 0.0  ;;  %v638_v54 = vmax.f32 %v576_v11, 0.0  ;;  %v596_v23 = vadd.f32 %v2578_v32, %v4191_v33 }
 0x19f   : > { %v1884_v36 = vmax.f32 %v3188_v15, 0.0  ;;  %2041 = vmatprep.mubr.f32.mxu0 %v1882_v51  ;;  %v566_v51 = vadd.f32 %v2578_v32, %v4179_v17  ;;  %v571_v15 = vadd.f32 %v4177_v16, %v2578_v32  ;;  %v639_v17 = vmax.f32 %v581_v10, 0.0 }
 0x1a0   : > { %2042 = vmatmul.mubr.f32.gmra.mrb[48].mxu0 %v1881_v6  ;;  %v591_v16 = vadd.f32 %v4185_v27, %v2578_v32  ;;  %v601_v22 = vadd.f32 %v4189_v31, %v2578_v32  ;;  %v611_v27 = vadd.f32 %v4193_v37, %v2578_v32  ;;  %v616_v33 = vadd.f32 %v2578_v32, %v4199_v20 }
 0x1a1   : > { %v1836_v8 = vpop.f32.mrb[20].mxu1  ;;  %2046 = vmatprep.mubr.f32.mxu0 %v1884_v36  ;;  %v637_v6 = vmax.f32 %v571_v15, 0.0  ;;  %v586_v36 = vadd.f32 %v2578_v32, %v4187_v28  ;;  %v606_v28 = vadd.f32 %v2578_v32, %v4195_v39  ;;  %v621_v31 = vadd.f32 %v4197_v21, %v2578_v32  ;;  %v2315_v21 = vld [vmem:[%s4447_s9] sm:$0xff] }
 0x1a2   : > { %v3189_v18 = vadd.f32 %v1836_v8, %v4224_v56  ;;  %v1838_v38 = vpop.f32.mrb[21].mxu1  ;;  %v626_v39 = vadd.f32 %v2578_v32, %v4203_v26  ;;  %v631_v37 = vadd.f32 %v4201_v25, %v2578_v32  ;;  %v2316_v26 = vld [vmem:[%s4447_s9 + $0x8] sm:$0xff]  ;;  %v2317_v25 = vld [vmem:[%s4447_s9 + $0x10] sm:$0xff] }
 0x1a3   : > { %v3190_v19 = vadd.f32 %v1838_v38, %v4226_v1  ;;  %v1840_v24 = vpop.f32.mrb[22].mxu1  ;;  %v640_v8 = vmax.f32 %v586_v36, 0.0  ;;  %v643_v38 = vmax.f32 %v601_v22, 0.0 }
 0x1a4   : > { %v1842_v35 = vpop.f32.mrb[23].mxu1  ;;  %2047 = vmatmul.mubr.f32.gmra.mrb[50].mxu0 %v1883_v14  ;;  %v1885_v45 = vmax.f32 %v3189_v18, 0.0  ;;  %v3191_v47 = vadd.f32 %v1840_v24, %v4224_v56  ;;  %v641_v14 = vmax.f32 %v591_v16, 0.0  ;;  %v642_v18 = vmax.f32 %v596_v23, 0.0 }
 0x1a5   : > { %v1886_v41 = vmax.f32 %v3190_v19, 0.0  ;;  %v3192_v43 = vadd.f32 %v1842_v35, %v4226_v1  ;;  %v644_v19 = vmax.f32 %v606_v28, 0.0  ;;  %v645_v24 = vmax.f32 %v611_v27, 0.0 }
 0x1a6   : > { %v1887_v61 = vmax.f32 %v3191_v47, 0.0  ;;  %v646_v35 = vmax.f32 %v616_v33, 0.0  ;;  %v649_v20 = vmax.f32 %v631_v37, 0.0  ;;  %v2318_v47 = vld [vmem:[%s4447_s9 + $0x18] sm:$0xff] }
 0x1a7   : > { %v1888_v55 = vmax.f32 %v3192_v43, 0.0  ;;  %2051 = vmatprep.mubr.f32.mxu0 %v1886_v41  ;;  %v647_v41 = vmax.f32 %v621_v31, 0.0  ;;  %v648_v43 = vmax.f32 %v626_v39, 0.0 }
 0x1a8   : > { %2052 = vmatmul.mubr.f32.gmra.mrb[52].mxu0 %v1885_v45  ;;  %v3089_v45 = vpack.c.bf16 %v2316_v26, %v2315_v21 }
 0x1a9   : > { %v1846_v60 = vpop.f32.mrb[24].mxu1  ;;  %2056 = vmatprep.mubr.f32.mxu0 %v1888_v55  ;;  %v3093_v55 = vpack.c.bf16 %v2318_v47, %v2317_v25 }
 0x1aa   : > { %v3193_v62 = vadd.f32 %v1846_v60, %v4224_v56  ;;  %v1848_v63 = vpop.f32.mrb[25].mxu1  ;;  %3090 = vmatprep.subr.bf16.mxu0 %v3089_v45  ;;  %v2319_v60 = vld [vmem:[%s4447_s9 + $0x20] sm:$0xff] }
 0x1ab   : > { %v3194_v0 = vadd.f32 %v1848_v63, %v4226_v1  ;;  %v1850_v2 = vpop.f32.mrb[26].mxu1  ;;  %v2321_v63 = vld [vmem:[%s4447_s9 + $0x30] sm:$0xff] }
 0x1ac   : > { %v1852_v3 = vpop.f32.mrb[27].mxu1  ;;  %2057 = vmatmul.mubr.f32.gmra.mrb[54].mxu0 %v1887_v61  ;;  %v1889_v7 = vmax.f32 %v3193_v62, 0.0  ;;  %v3195_v9 = vadd.f32 %v1850_v2, %v4224_v56  ;;  %v2320_v61 = vld [vmem:[%s4447_s9 + $0x28] sm:$0xff] }
 0x1ad   : > { %v1890_v4 = vmax.f32 %v3194_v0, 0.0  ;;  %v3196_v40 = vadd.f32 %v1852_v3, %v4226_v1  ;;  %v3097_v62 = vpack.c.bf16 %v2320_v61, %v2319_v60  ;;  %v2322_v0 = vld [vmem:[%s4447_s9 + $0x38] sm:$0xff]  ;;  %v2323_v3 = vld [vmem:[%s4447_s9 + $0x40] sm:$0xff] }
 0x1ae   : > { %v1891_v12 = vmax.f32 %v3195_v9, 0.0  ;;  %v3101_v2 = vpack.c.bf16 %v2322_v0, %v2321_v63  ;;  %v2326_v9 = vld [vmem:[%s4447_s9 + $0x58] sm:$0xff]  ;;  %v4385_v63 = vld [vmem:[%s4446_s8] ss:$0 sm:$0xff] }
 0x1af   : > { %v1892_v42 = vmax.f32 %v3196_v40, 0.0  ;;  %2061 = vmatprep.mubr.f32.mxu0 %v1890_v4  ;;  %v2324_v4 = vld [vmem:[%s4447_s9 + $0x48] sm:$0xff] }
 0x1b0   : > { %2062 = vmatmul.mubr.f32.gmra.mrb[56].mxu0 %v1889_v7  ;;  %v3105_v40 = vpack.c.bf16 %v2324_v4, %v2323_v3  ;;  %v2325_v7 = vld [vmem:[%s4447_s9 + $0x50] sm:$0xff] }
 0x1b1   : > { %v1856_v44 = vpop.f32.mrb[28].mxu1  ;;  %2066 = vmatprep.mubr.f32.mxu0 %v1892_v42  ;;  %v3109_v42 = vpack.c.bf16 %v2326_v9, %v2325_v7 }
 0x1b2   : > { %v3197_v13 = vadd.f32 %v1856_v44, %v4224_v56  ;;  %v1858_v49 = vpop.f32.mrb[29].mxu1  ;;  %v2327_v44 = vld [vmem:[%s4447_s9 + $0x60] sm:$0xff] }
 0x1b3   : > { %v3198_v29 = vadd.f32 %v1858_v49, %v4226_v1  ;;  %v1860_v30 = vpop.f32.mrb[30].mxu1  ;;  %v2329_v49 = vld [vmem:[%s4447_s9 + $0x70] sm:$0xff] }
 0x1b4   : > { %v1862_v34 = vpop.f32.mrb[31].mxu1  ;;  %2067 = vmatmul.mubr.f32.gmra.mrb[58].mxu0 %v1891_v12  ;;  %v1893_v52 = vmax.f32 %v3197_v13, 0.0  ;;  %v3199_v57 = vadd.f32 %v1860_v30, %v4224_v56  ;;  %v636_v56 = vmax.f32 %v566_v51, 0.0  ;;  %v2328_v12 = vld [vmem:[%s4447_s9 + $0x68] sm:$0xff] }
 0x1b5   : > { %v1894_v50 = vmax.f32 %v3198_v29, 0.0  ;;  %v3200_v48 = vadd.f32 %v1862_v34, %v4226_v1  ;;  %v635_v1 = vmax.f32 %v561_v59, 0.0  ;;  %v3113_v13 = vpack.c.bf16 %v2328_v12, %v2327_v44  ;;  %v2330_v29 = vld [vmem:[%s4447_s9 + $0x78] sm:$0xff] }
 0x1b6   : > { %v1895_v46 = vmax.f32 %v3199_v57, 0.0  ;;  %v3117_v30 = vpack.c.bf16 %v2330_v29, %v2329_v49 }
 0x1b7   : > { %v1896_v58 = vmax.f32 %v3200_v48, 0.0  ;;  %2071 = vmatprep.mubr.f32.mxu0 %v1894_v50 }
 0x1b8   : > { %2072 = vmatmul.mubr.f32.gmra.mrb[60].mxu0 %v1893_v52 }
 0x1b9   : > { %2076 = vmatprep.mubr.f32.mxu0 %v1896_v58 }
 0x1bc   : > { %2077 = vmatmul.mubr.f32.gmra.mrb[62].mxu0 %v1895_v46 }
 0x1bd   : > { %2957 = vmatprep.mubr.msk.f32.mxu0 %vm2082_vm1, %v634_v5 }
 0x1c0   : > { %2958 = vmatmul.mubr.msk.f32.vlgmr.msra.gmra.mrb[64].mxu0 %vm2082_vm1, %v635_v1 }
 0x1c1   : > { %2960 = vmatprep.mubr.msk.f32.mxu0 %vm2082_vm1, %v636_v56  ;;  %3092 = vmatpush3.bf16.msra.mxu0 %v3089_v45 }
 0x1c2   : > { %3094 = vmatprep.subr.bf16.mxu0 %v3093_v55 }
 0x1c4   : > { %2961 = vmatmul.mubr.msk.f32.gmra.mrb[66].mxu0 %vm2082_vm1, %v637_v6 }
 0x1c5   : > { %2963 = vmatprep.mubr.msk.f32.mxu0 %vm2082_vm1, %v638_v54  ;;  %3096 = vmatpush3.bf16.msra.mxu0 %v3093_v55 }
 0x1c6   : > { %3098 = vmatprep.subr.bf16.mxu0 %v3097_v62 }
 0x1c8   : > { %2964 = vmatmul.mubr.msk.f32.gmra.mrb[68].mxu0 %vm2082_vm1, %v639_v17 }
 0x1c9   : > { %2966 = vmatprep.mubr.msk.f32.mxu0 %vm2082_vm1, %v640_v8  ;;  %3100 = vmatpush3.bf16.msra.mxu0 %v3097_v62 }
 0x1ca   : > { %3102 = vmatprep.subr.bf16.mxu0 %v3101_v2 }
 0x1cc   : > { %2967 = vmatmul.mubr.msk.f32.gmra.mrb[70].mxu0 %vm2082_vm1, %v641_v14 }
 0x1cd   : > { %2969 = vmatprep.mubr.msk.f32.mxu0 %vm2082_vm1, %v642_v18  ;;  %3104 = vmatpush3.bf16.msra.mxu0 %v3101_v2 }
 0x1ce   : > { %3106 = vmatprep.subr.bf16.mxu0 %v3105_v40 }
 0x1d0   : > { %2970 = vmatmul.mubr.msk.f32.gmra.mrb[72].mxu0 %vm2082_vm1, %v643_v38 }
 0x1d1   : > { %2972 = vmatprep.mubr.msk.f32.mxu0 %vm2082_vm1, %v644_v19  ;;  %3108 = vmatpush3.bf16.msra.mxu0 %v3105_v40 }
 0x1d2   : > { %3110 = vmatprep.subr.bf16.mxu0 %v3109_v42 }
 0x1d4   : > { %2973 = vmatmul.mubr.msk.f32.gmra.mrb[74].mxu0 %vm2082_vm1, %v645_v24 }
 0x1d5   : > { %2975 = vmatprep.mubr.msk.f32.mxu0 %vm2082_vm1, %v646_v35  ;;  %3112 = vmatpush3.bf16.msra.mxu0 %v3109_v42 }
 0x1d6   : > { %3114 = vmatprep.subr.bf16.mxu0 %v3113_v13 }
 0x1d8   : > { %2976 = vmatmul.mubr.msk.f32.gmra.mrb[76].mxu0 %vm2082_vm1, %v647_v41 }
 0x1d9   : > { %2978 = vmatprep.mubr.msk.f32.mxu0 %vm2082_vm1, %v648_v43  ;;  %3116 = vmatpush3.bf16.msra.mxu0 %v3113_v13 }
 0x1da   : > { %3118 = vmatprep.subr.bf16.mxu0 %v3117_v30 }
 0x1dc   : > { %2979 = vmatmul.mubr.msk.f32.gmra.mrb[78].mxu0 %vm2082_vm1, %v649_v20 }
 0x1dd   : > { %3120 = vmatpush3.bf16.msra.mxu0 %v3117_v30 }
 0x235   : > { %v2809_v32 = vpop.f32.mrb[32].mxu0 }
 0x236   : > { %v2810_v34 = vpop.f32.mrb[33].mxu0 }
 0x237   : > { %v2811_v50 = vadd.f32 %v2810_v34, %v2809_v32 }
 0x239   : > { %v2812_v48 = vpop.f32.mrb[34].mxu0 }
 0x23a   : > { %v2813_v52 = vpop.f32.mrb[35].mxu0 }
 0x23b   : > { %v2814_v57 = vadd.f32 %v2813_v52, %v2812_v48 }
 0x23d   : > { %v2815_v53 = vpop.f32.mrb[36].mxu0 }
 0x23e   : > { %v2816_v58 = vpop.f32.mrb[37].mxu0 }
 0x23f   : > { %v2817_v59 = vadd.f32 %v2816_v58, %v2815_v53 }
 0x241   : > { %v2818_v46 = vpop.f32.mrb[38].mxu0 }
 0x242   : > { %v2819_v5 = vpop.f32.mrb[39].mxu0 }
 0x243   : > { %v2820_v51 = vadd.f32 %v2819_v5, %v2818_v46 }
 0x245   : > { %v2821_v1 = vpop.f32.mrb[40].mxu0 }
 0x246   : > { %v2822_v15 = vpop.f32.mrb[41].mxu0 }
 0x247   : > { %v2823_v56 = vadd.f32 %v2822_v15, %v2821_v1 }
 0x249   : > { %v2824_v11 = vpop.f32.mrb[42].mxu0 }
 0x24a   : > { %v2825_v6 = vpop.f32.mrb[43].mxu0 }
 0x24b   : > { %v2826_v10 = vadd.f32 %v2825_v6, %v2824_v11 }
 0x24d   : > { %v2827_v54 = vpop.f32.mrb[44].mxu0 }
 0x24e   : > { %v2828_v36 = vpop.f32.mrb[45].mxu0 }
 0x24f   : > { %v2829_v17 = vadd.f32 %v2828_v36, %v2827_v54 }
 0x251   : > { %v2830_v16 = vpop.f32.mrb[46].mxu0 }
 0x252   : > { %v2831_v8 = vpop.f32.mrb[47].mxu0 }
 0x253   : > { %v2832_v23 = vadd.f32 %v2831_v8, %v2830_v16 }
 0x273   : > { %v2833_v14 = vpop.f32.mrb[48].mxu0 }
 0x274   : > { %v2834_v22 = vpop.f32.mrb[49].mxu0 }
 0x275   : > { %v4370_v18 = vadd.f32 %v2834_v22, %v2833_v14 }
 0x277   : > { %v2836_v28 = vpop.f32.mrb[50].mxu0 }
 0x278   : > { %v2837_v38 = vpop.f32.mrb[51].mxu0 }
 0x279   : > { %v2838_v27 = vadd.f32 %v2837_v38, %v2836_v28 }
 0x27b   : > { %v2839_v19 = vpop.f32.mrb[52].mxu0 }
 0x27c   : > { %v2840_v33 = vpop.f32.mrb[53].mxu0 }
 0x27d   : > { %v4372_v24 = vadd.f32 %v2840_v33, %v2839_v19 }
 0x27f   : > { %v2842_v31 = vpop.f32.mrb[54].mxu0 }
 0x280   : > { %v2843_v35 = vpop.f32.mrb[55].mxu0 }
 0x281   : > { %v2844_v39 = vadd.f32 %v2843_v35, %v2842_v31 }
 0x283   : > { %v2845_v41 = vpop.f32.mrb[56].mxu0 }
 0x284   : > { %v2846_v37 = vpop.f32.mrb[57].mxu0 }
 0x285   : > { %v4374_v43 = vadd.f32 %v2846_v37, %v2845_v41 }
 0x287   : > { %v2848_v20 = vpop.f32.mrb[58].mxu0 }
 0x288   : > { %v2849_v21 = vpop.f32.mrb[59].mxu0 }
 0x289   : > { %v4376_v26 = vadd.f32 %v2849_v21, %v2848_v20 }
 0x28b   : > { %v2851_v45 = vpop.f32.mrb[60].mxu0 }
 0x28c   : > { %v2852_v25 = vpop.f32.mrb[61].mxu0 }
 0x28d   : > { %v4378_v47 = vadd.f32 %v2852_v25, %v2851_v45 }
 0x28f   : > { %v2854_v55 = vpop.f32.mrb[62].mxu0 }
 0x290   : > { %v2855_v60 = vpop.f32.mrb[63].mxu0 }
 0x291   : > { %v4380_v61 = vadd.f32 %v2855_v60, %v2854_v55 }
 0x293   : > { %v2959_v62 = vpop.f32.mrb[64].mxu0 }
 0x294   : > { %v2203_v0 = vadd.f32 %v2959_v62, %v2814_v57  ;;  %v2197_v2 = vpop.f32.mrb[65].mxu0 }
 0x295   : > { %v2198_v3 = vadd.f32 %v2811_v50, %v2197_v2 }
 0x296   : > { %v2284_v4 = vadd.f32 %v4385_v63, %v2203_v0 }
 0x297   : > { %v2283_v40 = vadd.f32 %v4385_v63, %v2198_v3  ;;  %v2962_v7 = vpop.f32.mrb[66].mxu0 }
 0x298   : > { %v2213_v9 = vadd.f32 %v2962_v7, %v2820_v51  ;;  %v2207_v42 = vpop.f32.mrb[67].mxu0  ;;  %v2300_v13 = vmax.f32 %v2284_v4, 0.0 }
 0x299   : > { %v2299_v44 = vmax.f32 %v2283_v40, 0.0  ;;  %v2208_v12 = vadd.f32 %v2817_v59, %v2207_v42 }
 0x29a   : > { %v2286_v49 = vadd.f32 %v4385_v63, %v2213_v9 }
 0x29b   : > { %v2285_v29 = vadd.f32 %v4385_v63, %v2208_v12  ;;  %v2965_v30 = vpop.f32.mrb[68].mxu0  ;;  %3013 = vmatprep.mubr.f32.mxu0 %v2299_v44 }
 0x29c   : > { %v2223_v32 = vadd.f32 %v2965_v30, %v2826_v10  ;;  %v2217_v34 = vpop.f32.mrb[69].mxu0  ;;  %3014 = vmatmul.mubr.f32.vlgmr.msra.gmra.mrb[80].mxu0 %v2300_v13  ;;  %v2302_v52 = vmax.f32 %v2286_v49, 0.0 }
 0x29d   : > { %v2301_v50 = vmax.f32 %v2285_v29, 0.0  ;;  %v2218_v48 = vadd.f32 %v2823_v56, %v2217_v34 }
 0x29e   : > { %v2288_v57 = vadd.f32 %v4385_v63, %v2223_v32 }
 0x29f   : > { %v2287_v53 = vadd.f32 %v4385_v63, %v2218_v48  ;;  %v2968_v58 = vpop.f32.mrb[70].mxu0  ;;  %3016 = vmatprep.mubr.f32.mxu0 %v2301_v50 }
 0x2a0   : > { %v2233_v59 = vadd.f32 %v2968_v58, %v2832_v23  ;;  %v2227_v46 = vpop.f32.mrb[71].mxu0  ;;  %3017 = vmatmul.mubr.f32.gmra.mrb[82].mxu0 %v2302_v52  ;;  %v2304_v1 = vmax.f32 %v2288_v57, 0.0 }
 0x2a1   : > { %v2303_v5 = vmax.f32 %v2287_v53, 0.0  ;;  %v2228_v51 = vadd.f32 %v2829_v17, %v2227_v46 }
 0x2a2   : > { %v2290_v15 = vadd.f32 %v4385_v63, %v2233_v59 }
 0x2a3   : > { %v2289_v11 = vadd.f32 %v4385_v63, %v2228_v51  ;;  %v2971_v6 = vpop.f32.mrb[72].mxu0  ;;  %3019 = vmatprep.mubr.f32.mxu0 %v2303_v5 }
 0x2a4   : > { %v2243_v56 = vadd.f32 %v2971_v6, %v2838_v27  ;;  %v2237_v10 = vpop.f32.mrb[73].mxu0  ;;  %3020 = vmatmul.mubr.f32.gmra.mrb[84].mxu0 %v2304_v1  ;;  %v2306_v16 = vmax.f32 %v2290_v15, 0.0 }
 0x2a5   : > { %v2305_v54 = vmax.f32 %v2289_v11, 0.0  ;;  %v2238_v36 = vadd.f32 %v4370_v18, %v2237_v10 }
 0x2a6   : > { %v2292_v8 = vadd.f32 %v4385_v63, %v2243_v56 }
 0x2a7   : > { %v2291_v23 = vadd.f32 %v4385_v63, %v2238_v36  ;;  %v2974_v14 = vpop.f32.mrb[74].mxu0  ;;  %3022 = vmatprep.mubr.f32.mxu0 %v2305_v54 }
 0x2a8   : > { %v2253_v17 = vadd.f32 %v2974_v14, %v2844_v39  ;;  %v2247_v22 = vpop.f32.mrb[75].mxu0  ;;  %3023 = vmatmul.mubr.f32.gmra.mrb[86].mxu0 %v2306_v16  ;;  %v2308_v19 = vmax.f32 %v2292_v8, 0.0 }
 0x2a9   : > { %v2307_v28 = vmax.f32 %v2291_v23, 0.0  ;;  %v2248_v38 = vadd.f32 %v4372_v24, %v2247_v22 }
 0x2aa   : > { %v2294_v27 = vadd.f32 %v4385_v63, %v2253_v17 }
 0x2ab   : > { %v2293_v33 = vadd.f32 %v4385_v63, %v2248_v38  ;;  %v2977_v31 = vpop.f32.mrb[76].mxu0  ;;  %3025 = vmatprep.mubr.f32.mxu0 %v2307_v28 }
 0x2ac   : > { %v2263_v18 = vadd.f32 %v2977_v31, %v4376_v26  ;;  %v2257_v35 = vpop.f32.mrb[77].mxu0  ;;  %3026 = vmatmul.mubr.f32.gmra.mrb[88].mxu0 %v2308_v19  ;;  %v2310_v39 = vmax.f32 %v2294_v27, 0.0 }
 0x2ad   : > { %v2309_v41 = vmax.f32 %v2293_v33, 0.0  ;;  %v2258_v37 = vadd.f32 %v4374_v43, %v2257_v35 }
 0x2ae   : > { %v2296_v20 = vadd.f32 %v4385_v63, %v2263_v18 }
 0x2af   : > { %v2295_v21 = vadd.f32 %v4385_v63, %v2258_v37  ;;  %v2980_v24 = vpop.f32.mrb[78].mxu0  ;;  %3028 = vmatprep.mubr.f32.mxu0 %v2309_v41 }
 0x2b0   : > { %v2273_v45 = vadd.f32 %v2980_v24, %v4380_v61  ;;  %v2267_v25 = vpop.f32.mrb[79].mxu0  ;;  %3029 = vmatmul.mubr.f32.gmra.mrb[90].mxu0 %v2310_v39  ;;  %v2312_v60 = vmax.f32 %v2296_v20, 0.0  ;;  %v2756_v61 = vld [vmem:[%s4448_s10] ss:$0 sm:$0xff] }
 0x2b1   : > { %v2311_v55 = vmax.f32 %v2295_v21, 0.0  ;;  %v2268_v26 = vadd.f32 %v4378_v47, %v2267_v25 }
 0x2b2   : > { %v2298_v62 = vadd.f32 %v4385_v63, %v2273_v45 }
 0x2b3   : > { %v2297_v43 = vadd.f32 %v4385_v63, %v2268_v26  ;;  %3031 = vmatprep.mubr.f32.mxu0 %v2311_v55 }
 0x2b4   : > { %3032 = vmatmul.mubr.f32.gmra.mrb[92].mxu0 %v2312_v60  ;;  %v2314_v2 = vmax.f32 %v2298_v62, 0.0 }
 0x2b5   : > { %v2313_v0 = vmax.f32 %v2297_v43, 0.0 }
 0x2b7   : > { %3034 = vmatprep.mubr.f32.mxu0 %v2313_v0 }
 0x2b8   : > { %3035 = vmatmul.mubr.f32.gmra.mrb[94].mxu0 %v2314_v2 }
 0x36f   : > { %v3015_v47 = vpop.f32.mrb[80].mxu0 }
 0x370   : > { %v2410_v63 = vadd.f32 %v3015_v47, %v2756_v61  ;;  %v2404_v3 = vpop.f32.mrb[81].mxu0 }
 0x371   : > { %v2405_v4 = vadd.f32 %v2756_v61, %v2404_v3 }
 0x372   : > { %2484 = vst [vmem:[%s4417_s13 + $0x8] sm:$0xff] %v2410_v63 }
 0x373   : > { %2483 = vst [vmem:[%s4417_s13] sm:$0xff] %v2405_v4  ;;  %v3018_v40 = vpop.f32.mrb[82].mxu0 }
 0x374   : > { %v2420_v7 = vadd.f32 %v3018_v40, %v2756_v61  ;;  %v2414_v9 = vpop.f32.mrb[83].mxu0 }
 0x375   : > { %v2415_v42 = vadd.f32 %v2756_v61, %v2414_v9 }
 0x376   : > { %2486 = vst [vmem:[%s4417_s13 + $0x18] sm:$0xff] %v2420_v7 }
 0x377   : > { %2485 = vst [vmem:[%s4417_s13 + $0x10] sm:$0xff] %v2415_v42  ;;  %v3021_v44 = vpop.f32.mrb[84].mxu0 }
 0x378   : > { %v2430_v12 = vadd.f32 %v3021_v44, %v2756_v61  ;;  %v2424_v13 = vpop.f32.mrb[85].mxu0 }
 0x379   : > { %v2425_v49 = vadd.f32 %v2756_v61, %v2424_v13 }
 0x37a   : > { %2488 = vst [vmem:[%s4417_s13 + $0x28] sm:$0xff] %v2430_v12 }
 0x37b   : > { %2487 = vst [vmem:[%s4417_s13 + $0x20] sm:$0xff] %v2425_v49  ;;  %v3024_v29 = vpop.f32.mrb[86].mxu0 }
 0x37c   : > { %v2440_v30 = vadd.f32 %v3024_v29, %v2756_v61  ;;  %v2434_v32 = vpop.f32.mrb[87].mxu0 }
 0x37d   : > { %v2435_v34 = vadd.f32 %v2756_v61, %v2434_v32 }
 0x37e   : > { %2490 = vst [vmem:[%s4417_s13 + $0x38] sm:$0xff] %v2440_v30 }
 0x37f   : > { %2489 = vst [vmem:[%s4417_s13 + $0x30] sm:$0xff] %v2435_v34  ;;  %v3027_v50 = vpop.f32.mrb[88].mxu0 }
 0x380   : > { %v2450_v48 = vadd.f32 %v3027_v50, %v2756_v61  ;;  %v2444_v52 = vpop.f32.mrb[89].mxu0 }
 0x381   : > { %v2445_v57 = vadd.f32 %v2756_v61, %v2444_v52 }
 0x382   : > { %2492 = vst [vmem:[%s4417_s13 + $0x48] sm:$0xff] %v2450_v48 }
 0x383   : > { %2491 = vst [vmem:[%s4417_s13 + $0x40] sm:$0xff] %v2445_v57  ;;  %v3030_v53 = vpop.f32.mrb[90].mxu0 }
 0x384   : > { %v2460_v58 = vadd.f32 %v3030_v53, %v2756_v61  ;;  %v2454_v59 = vpop.f32.mrb[91].mxu0 }
 0x385   : > { %v2455_v46 = vadd.f32 %v2756_v61, %v2454_v59 }
 0x386   : > { %2494 = vst [vmem:[%s4417_s13 + $0x58] sm:$0xff] %v2460_v58 }
 0x387   : > { %2493 = vst [vmem:[%s4417_s13 + $0x50] sm:$0xff] %v2455_v46  ;;  %v3033_v5 = vpop.f32.mrb[92].mxu0 }
 0x388   : > { %v2470_v51 = vadd.f32 %v3033_v5, %v2756_v61  ;;  %v2464_v1 = vpop.f32.mrb[93].mxu0 }
 0x389   : > { %v2465_v15 = vadd.f32 %v2756_v61, %v2464_v1 }
 0x38a   : > { %2496 = vst [vmem:[%s4417_s13 + $0x68] sm:$0xff] %v2470_v51 }
 0x38b   : > { %2495 = vst [vmem:[%s4417_s13 + $0x60] sm:$0xff] %v2465_v15  ;;  %v3036_v11 = vpop.f32.mrb[94].mxu0 }
 0x38c   : > { %v2480_v6 = vadd.f32 %v3036_v11, %v2756_v61  ;;  %v2474_v56 = vpop.f32.mrb[95].mxu0 }
 0x38d   : > { %v2475_v10 = vadd.f32 %v2756_v61, %v2474_v56 }
 0x38e   : > { %2498 = vst [vmem:[%s4417_s13 + $0x78] sm:$0xff] %v2480_v6 }
 0x38f   : > { %2497 = vst [vmem:[%s4417_s13 + $0x70] sm:$0xff] %v2475_v10 }
 0x390 PF: > { %s21_s17 = sadd.s32 1, %s3480_s17  }
 0x391   : > { %p18_p4 = scmp.ge.s32.totalorder %s21_s17, 4  }
 0x393   :  { %20 = sbr.rel (!%p18_p4) target bundleno = 1 (0x1), region = 97 }

</bundles_post_ra>
